<compile_context>
chip_gen: v7x
topology: tpu7x:2x2x1
jax: 0.10.0
libtpu: 0.0.40
codegen_flags: <defaults>
</compile_context>

<pallas_src>
import functools

import numpy as np
import jax
import jax.numpy as jnp
from jax import lax
from jax.experimental import pallas as pl
from jax.experimental.pallas import tpu as pltpu

MARGIN = 0.2       # nn.TripletMarginLoss(margin=0.2)
PAIR_EPS = 1e-6    # F.pairwise_distance eps inside TripletMarginLoss
NORM_EPS = 1e-12   # F.normalize eps
PROT_EPS = 1e-5    # prototype denominator eps


def _class_aware_triplet_kernel(x_ref, lab_ref, prot_ref,            # inputs
                                loss_ref, newprot_ref,                # outputs
                                loss_acc, protnum_acc, protden_acc,   # scratch
                                *, batch_size):
    step = pl.program_id(0)

    @pl.when(step == 0)
    def _init():
        loss_acc[...] = jnp.zeros_like(loss_acc)
        protnum_acc[...] = jnp.zeros_like(protnum_acc)
        protden_acc[...] = jnp.zeros_like(protden_acc)

    x = x_ref[...].astype(jnp.float32)                     # (TB, C, D)
    TB, C, D = x.shape
    i0 = pl.multiple_of(step * TB, TB)
    lab = lab_ref[pl.ds(i0, TB), :].astype(jnp.float32)    # (TB, C)
    prot = prot_ref[...].astype(jnp.float32)               # (C, D)

    # ---- F.normalize(p=2, dim=-1): x * rsqrt(max(||x||^2, eps^2))  (EUP) ----
    sumsq = jnp.sum(x * x, axis=-1, keepdims=True)
    xn = x * lax.rsqrt(jnp.maximum(sumsq, NORM_EPS * NORM_EPS))      # (TB,C,D)

    # element sums needed for the exact pairwise_distance eps correction
    sx = jnp.sum(xn, axis=-1)                               # (TB, C)
    sp = jnp.sum(prot, axis=-1)                             # (C,)
    psq = jnp.sum(prot * prot, axis=-1)                     # (C,)

    # ---- squared cdist(xn, prot): ||xn||^2(=1) + ||prot||^2 - 2<xn,prot> ----
    xp = lax.dot_general(xn.reshape(TB * C, D), prot,
                         (((1,), (1,)), ((), ())),
                         preferred_element_type=jnp.float32).reshape(TB, C, C)
    d2 = jnp.maximum(1.0 + psq[None, None, :] - 2.0 * xp, 0.0)       # (TB,C,C)

    # ---- nearest prototype of a *different* class (first index on ties) -----
    c_iota = lax.broadcasted_iota(jnp.int32, (TB, C, C), 1)
    k_iota = lax.broadcasted_iota(jnp.int32, (TB, C, C), 2)
    diag = c_iota == k_iota
    masked = jnp.where(diag, jnp.inf, d2)
    d2_an = jnp.min(masked, axis=-1, keepdims=True)                  # (TB,C,1)
    neg_idx = jnp.min(jnp.where(masked <= d2_an, k_iota, C), axis=-1)  # (TB,C)
    sp_neg = jnp.sum(jnp.where(k_iota == neg_idx[:, :, None],
                               sp[None, None, :], 0.0), axis=-1)     # (TB, C)
    d2_ap = jnp.sum(jnp.where(diag, d2, 0.0), axis=-1)               # diag(d2)

    # ---- TripletMarginLoss(margin=0.2, p=2): d = ||a - b + eps||_2 ----------
    # ||a - b + eps||^2 = ||a - b||^2 + 2*eps*(sum(a) - sum(b)) + D*eps^2
    eps_dd = D * PAIR_EPS * PAIR_EPS
    d_ap = jnp.sqrt(jnp.maximum(
        d2_ap + 2.0 * PAIR_EPS * (sx - sp[None, :]) + eps_dd, 0.0))
    d_an = jnp.sqrt(jnp.maximum(
        d2_an[:, :, 0] + 2.0 * PAIR_EPS * (sx - sp_neg) + eps_dd, 0.0))
    trip = jnp.maximum(d_ap - d_an + MARGIN, 0.0)                    # (TB, C)

    # ---- accumulate loss numerator and prototype sums across batch tiles ----
    lab_row = jnp.sum(lab, axis=-1, keepdims=True)                   # (TB, 1)
    per_b = (jnp.sum(trip * lab, axis=-1, keepdims=True)
             * pl.reciprocal(lab_row, approx=True))
    loss_acc[...] += jnp.reshape(jnp.sum(per_b), (1, 1))
    protnum_acc[...] += jnp.sum(lab[:, :, None] * xn, axis=0)        # (C, D)
    protden_acc[...] += jnp.sum(lab, axis=0)[:, None]                # (C, 1)

    # ---- finalize on the last batch tile -------------------------------------
    @pl.when(step == pl.num_programs(0) - 1)
    def _finalize():
        lab_col = protden_acc[...]                                   # (C, 1)
        total = jnp.sum(lab_col)
        cur_prot = protnum_acc[...] * pl.reciprocal(lab_col + PROT_EPS,
                                                    approx=True)     # (C, D)
        all_zero = jnp.max(jnp.abs(prot), axis=-1, keepdims=True) == 0.0
        cand = jnp.where(all_zero, cur_prot, 0.9 * prot + 0.1 * cur_prot)
        newprot_ref[...] = jnp.where(lab_col > 0.0, cand, prot)
        mean_loss = loss_acc[...] * (1.0 / float(batch_size))
        loss_ref[...] = jnp.where(total > 0.0, mean_loss,
                                  jnp.zeros_like(mean_loss))


def _pick_batch_tile(B, C, D, budget_bytes=16 * 1024 * 1024):
    """Largest batch-tile (divisor of B) whose f32 working set fits the budget."""
    # per batch row: double-buffered input tile + xn + ~6 (C,C) intermediates.
    per_row = 4 * (3 * C * D + 6 * C * C + 4 * C)
    tb = int(max(1, min(B, budget_bytes // max(per_row, 1))))
    while B % tb:
        tb -= 1
    return tb


def class_aware_triplet_loss(inputs, label, pos_prot, only_update=False,
                             block_b=None):
    """JAX/Pallas equivalent of ClassAwareTripletLoss.forward.

    inputs  : (B, C, D), any float dtype (kept native across the HBM DMA).
    label   : (B, C, 1) or (B, C).
    pos_prot: (C, D).
    Returns (loss_scalar, new_pos_prot). `only_update` is a static Python bool.
    """
    B, C, D = inputs.shape
    lab2d = label[..., 0] if label.ndim == 3 else label              # (B, C)
    tb = block_b if block_b is not None else _pick_batch_tile(B, C, D)
    if B % tb:
        raise ValueError(f"block_b={tb} must divide batch size {B}")
    nb = B // tb

    kernel = functools.partial(_class_aware_triplet_kernel, batch_size=B)
    loss2d, new_prot = pl.pallas_call(
        kernel,
        out_shape=(jax.ShapeDtypeStruct((1, 1), jnp.float32),
                   jax.ShapeDtypeStruct((C, D), jnp.float32)),
        grid=(nb,),
        in_specs=[pl.BlockSpec((tb, C, D), lambda i: (i, 0, 0)),   # batch tile
                  pl.BlockSpec((B, C), lambda i: (0, 0)),          # labels (tiny, resident)
                  pl.BlockSpec((C, D), lambda i: (0, 0))],         # prototypes (resident)
        out_specs=(pl.BlockSpec((1, 1), lambda i: (0, 0)),
                   pl.BlockSpec((C, D), lambda i: (0, 0))),
        scratch_shapes=[pltpu.VMEM((1, 1), jnp.float32),    # loss numerator
                        pltpu.VMEM((C, D), jnp.float32),    # sum(label * xn)
                        pltpu.VMEM((C, 1), jnp.float32)],   # per-class label count
        compiler_params=pltpu.CompilerParams(
            dimension_semantics=("arbitrary",),
            vmem_limit_bytes=32 * 1024 * 1024),
    )(inputs, lab2d, pos_prot)

    loss = loss2d[0, 0]
    if only_update:                       # torch returns the python int 0
        loss = jnp.zeros((), jnp.float32)
    return loss, new_prot


def _reference_numpy(inputs, label, pos_prot):
    """Straight NumPy transcription of the PyTorch forward (sanity check)."""
    x = np.asarray(inputs, np.float32)
    lab = np.asarray(label, np.float32)[..., 0]
    prot = np.asarray(pos_prot, np.float32)
    B, C, D = x.shape
    xn = x / np.maximum(np.linalg.norm(x, axis=-1, keepdims=True), NORM_EPS)
    prot_dist = np.linalg.norm(xn[:, :, None, :] - prot[None, None, :, :], axis=-1)
    trip = np.zeros((B, C), np.float32)
    for c in range(C):
        for b in range(B):
            order = np.argsort(prot_dist[b, c])
            neg_cls = next(int(p) for p in order if int(p) != c)
            a, pos, neg = xn[b, c], prot[c], prot[neg_cls]
            d_ap = np.linalg.norm(a - pos + PAIR_EPS)
            d_an = np.linalg.norm(a - neg + PAIR_EPS)
            trip[b, c] = max(d_ap - d_an + MARGIN, 0.0)
    loss = ((trip * lab).sum(-1) / lab.sum(-1)).mean() if lab.sum() > 0 else 0.0
    lab_col = lab.sum(0)
    cur_prot = (lab[:, :, None] * xn).sum(0) / (lab_col[:, None] + PROT_EPS)
    new_prot = prot.copy()
    for c in range(C):
        if lab_col[c] > 0:
            if np.all(prot[c] == 0):
                new_prot[c] = cur_prot[c]
            else:
                new_prot[c] = 0.9 * prot[c] + 0.1 * cur_prot[c]
    return np.float32(loss), new_prot


if __name__ == "__main__":
    key = jax.random.PRNGKey(0)
    B, C, D = 8, 16, 128
    k1, k2, k3 = jax.random.split(key, 3)

    inputs = jax.random.normal(k1, (B, C, D), jnp.float32)
    lab01 = (jax.random.uniform(k2, (B, C)) > 0.5).astype(jnp.float32)
    lab01 = lab01.at[:, 0].set(1.0)        # every sample has >= 1 positive class
    label = lab01[:, :, None]              # torch layout (B, C, 1)

    # deterministic "module state" prototypes (synthetic init, not a checkpoint)
    pos_prot = jax.random.normal(k3, (C, D), jnp.float32)
    pos_prot = pos_prot / jnp.linalg.norm(pos_prot, axis=-1, keepdims=True)
    pos_prot = pos_prot.at[C - 1].set(0.0)  # exercise the "all-zero prototype" branch

    # block_b=2 -> grid of 4 batch tiles: exercises init / accumulate / finalize.
    loss, new_prot = class_aware_triplet_loss(inputs, label, pos_prot,
                                              only_update=False, block_b=2)
    jax.block_until_ready((loss, new_prot))

    ref_loss, ref_prot = _reference_numpy(inputs, label, pos_prot)
    assert np.isfinite(float(loss))
    assert np.allclose(np.asarray(loss), ref_loss, rtol=2e-3, atol=2e-3), (
        float(loss), float(ref_loss))
    assert np.allclose(np.asarray(new_prot), ref_prot, rtol=2e-3, atol=2e-3)
    print("KERNEL_OK")
</pallas_src>

<mosaic_0001>
module attributes {stable_mosaic.version = 11 : i64} {
  func.func @_class_aware_triplet_kernel(%arg0: i32, %arg1: memref<2x16x128xf32, #tpu.memory_space<vmem>>, %arg2: memref<8x16xf32, #tpu.memory_space<vmem>>, %arg3: memref<16x128xf32, #tpu.memory_space<vmem>>, %arg4: memref<1x1xf32, #tpu.memory_space<vmem>>, %arg5: memref<16x128xf32, #tpu.memory_space<vmem>>, %arg6: memref<1x1xf32, #tpu.memory_space<vmem>>, %arg7: memref<16x128xf32, #tpu.memory_space<vmem>>, %arg8: memref<16x1xf32, #tpu.memory_space<vmem>>) attributes {dimension_semantics = [#tpu.dimension_semantics<arbitrary>], iteration_bounds = array<i64: 4>, scalar_prefetch = 0 : i64, scratch_operands = 3 : i64, tpu.core_type = #tpu.core_type<tc>, window_params = [{transform_indices = @transform_0, window_bounds = array<i64: 2, 16, 128>}, {pipeline_mode = #tpu.pipeline_mode<synchronous>, transform_indices = @transform_1, window_bounds = array<i64: 8, 16>}, {pipeline_mode = #tpu.pipeline_mode<synchronous>, transform_indices = @transform_2, window_bounds = array<i64: 16, 128>}, {pipeline_mode = #tpu.pipeline_mode<synchronous>, transform_indices = @transform_3, window_bounds = array<i64: 1, 1>}, {pipeline_mode = #tpu.pipeline_mode<synchronous>, transform_indices = @transform_4, window_bounds = array<i64: 16, 128>}]} {
    %c0_i32 = arith.constant 0 : i32
    %0 = arith.cmpi eq, %arg0, %c0_i32 : i32
    %1 = arith.extui %0 : i1 to i32
    %c0_i32_0 = arith.constant 0 : i32
    %2 = arith.cmpi ne, %1, %c0_i32_0 : i32
    scf.if %2 {
      %cst_47 = arith.constant 0.000000e+00 : f32
      %113 = vector.broadcast %cst_47 : f32 to vector<1x1xf32>
      %c0_48 = arith.constant 0 : index
      %c0_49 = arith.constant 0 : index
      %114 = vector.load %arg6[%c0_48, %c0_49] : memref<1x1xf32, #tpu.memory_space<vmem>>, vector<1x1xf32>
      tpu.vector_store %arg6[%c0_48, %c0_49], %113 {strides = array<i32>} : memref<1x1xf32, #tpu.memory_space<vmem>>, vector<1x1xf32>,
      %cst_50 = arith.constant 0.000000e+00 : f32
      %115 = vector.broadcast %cst_50 : f32 to vector<16x128xf32>
      %c0_51 = arith.constant 0 : index
      %c0_52 = arith.constant 0 : index
      %116 = vector.load %arg7[%c0_51, %c0_52] : memref<16x128xf32, #tpu.memory_space<vmem>>, vector<16x128xf32>
      tpu.vector_store %arg7[%c0_51, %c0_52], %115 {strides = array<i32>} : memref<16x128xf32, #tpu.memory_space<vmem>>, vector<16x128xf32>,
      %cst_53 = arith.constant 0.000000e+00 : f32
      %117 = vector.broadcast %cst_53 : f32 to vector<16x1xf32>
      %c0_54 = arith.constant 0 : index
      %c0_55 = arith.constant 0 : index
      %118 = vector.load %arg8[%c0_54, %c0_55] : memref<16x1xf32, #tpu.memory_space<vmem>>, vector<16x1xf32>
      tpu.vector_store %arg8[%c0_54, %c0_55], %117 {strides = array<i32>} : memref<16x1xf32, #tpu.memory_space<vmem>>, vector<16x1xf32>,
    } else {
    }
    %c0 = arith.constant 0 : index
    %c0_1 = arith.constant 0 : index
    %c0_2 = arith.constant 0 : index
    %3 = vector.load %arg1[%c0, %c0_1, %c0_2] : memref<2x16x128xf32, #tpu.memory_space<vmem>>, vector<2x16x128xf32>
    %c2_i32 = arith.constant 2 : i32
    %4 = arith.muli %arg0, %c2_i32 : i32
    %5 = tpu.assume_multiple %4, 2 : i32
    %6 = arith.index_cast %5 : i32 to index
    %c0_3 = arith.constant 0 : index
    %7 = vector.load %arg2[%6, %c0_3] : memref<8x16xf32, #tpu.memory_space<vmem>>, vector<2x16xf32>
    %c0_4 = arith.constant 0 : index
    %c0_5 = arith.constant 0 : index
    %8 = vector.load %arg3[%c0_4, %c0_5] : memref<16x128xf32, #tpu.memory_space<vmem>>, vector<16x128xf32>
    %9 = arith.mulf %3, %3 : vector<2x16x128xf32>
    %cst = arith.constant dense<0.000000e+00> : vector<2x16xf32>
    %10 = vector.multi_reduction <add>, %9, %cst [2] : vector<2x16x128xf32> to vector<2x16xf32>
    %11 = vector.shape_cast %10 : vector<2x16xf32> to vector<2x16x1xf32>
    %cst_6 = arith.constant 1.000000e-24 : f32
    %12 = vector.broadcast %cst_6 : f32 to vector<2x16x1xf32>
    %13 = arith.maximumf %11, %12 : vector<2x16x1xf32>
    %14 = math.rsqrt %13 : vector<2x16x1xf32>
    %15 = vector.broadcast %14 : vector<2x16x1xf32> to vector<2x16x128xf32>
    %16 = arith.mulf %3, %15 : vector<2x16x128xf32>
    %cst_7 = arith.constant dense<0.000000e+00> : vector<2x16xf32>
    %17 = vector.multi_reduction <add>, %16, %cst_7 [2] : vector<2x16x128xf32> to vector<2x16xf32>
    %cst_8 = arith.constant dense<0.000000e+00> : vector<16xf32>
    %18 = vector.multi_reduction <add>, %8, %cst_8 [1] : vector<16x128xf32> to vector<16xf32>
    %19 = arith.mulf %8, %8 : vector<16x128xf32>
    %cst_9 = arith.constant dense<0.000000e+00> : vector<16xf32>
    %20 = vector.multi_reduction <add>, %19, %cst_9 [1] : vector<16x128xf32> to vector<16xf32>
    %21 = vector.shape_cast %16 : vector<2x16x128xf32> to vector<32x128xf32>
    %cst_10 = arith.constant dense<0.000000e+00> : vector<32x16xf32>
    %22 = tpu.matmul %21, %8, %cst_10 {dimension_numbers = #tpu.dot_dimension_numbers<[1], [1], [0], [0], [0, 0, 1, 0], [], []>} : vector<32x128xf32>, vector<16x128xf32>, vector<32x16xf32> -> vector<32x16xf32>
    %23 = vector.shape_cast %22 : vector<32x16xf32> to vector<2x16x16xf32>
    %24 = vector.shape_cast %20 : vector<16xf32> to vector<1x1x16xf32>
    %cst_11 = arith.constant 1.000000e+00 : f32
    %25 = vector.broadcast %cst_11 : f32 to vector<1x1x16xf32>
    %26 = arith.addf %25, %24 : vector<1x1x16xf32>
    %cst_12 = arith.constant 2.000000e+00 : f32
    %27 = vector.broadcast %cst_12 : f32 to vector<2x16x16xf32>
    %28 = arith.mulf %27, %23 : vector<2x16x16xf32>
    %29 = vector.broadcast %26 : vector<1x1x16xf32> to vector<2x16x16xf32>
    %30 = arith.subf %29, %28 : vector<2x16x16xf32>
    %cst_13 = arith.constant 0.000000e+00 : f32
    %31 = vector.broadcast %cst_13 : f32 to vector<2x16x16xf32>
    %32 = arith.maximumf %30, %31 : vector<2x16x16xf32>
    %33 = tpu.iota {dimensions = array<i32: 1>} : vector<2x16x16xi32>
    %34 = tpu.iota {dimensions = array<i32: 2>} : vector<2x16x16xi32>
    %35 = arith.cmpi eq, %33, %34 : vector<2x16x16xi32>
    %cst_14 = arith.constant 0x7F800000 : f32
    %36 = vector.broadcast %cst_14 : f32 to vector<2x16x16xf32>
    %37 = arith.select %35, %36, %32 : vector<2x16x16xi1>, vector<2x16x16xf32>
    %cst_15 = arith.constant dense<0x7F800000> : vector<2x16xf32>
    %38 = vector.multi_reduction <minimumf>, %37, %cst_15 [2] : vector<2x16x16xf32> to vector<2x16xf32>
    %39 = vector.shape_cast %38 : vector<2x16xf32> to vector<2x16x1xf32>
    %40 = vector.broadcast %39 : vector<2x16x1xf32> to vector<2x16x16xf32>
    %41 = arith.cmpf ole, %37, %40 : vector<2x16x16xf32>
    %c16_i32 = arith.constant 16 : i32
    %42 = vector.broadcast %c16_i32 : i32 to vector<2x16x16xi32>
    %43 = arith.select %41, %34, %42 : vector<2x16x16xi1>, vector<2x16x16xi32>
    %cst_16 = arith.constant dense<2147483647> : vector<2x16xi32>
    %44 = vector.multi_reduction <minsi>, %43, %cst_16 [2] : vector<2x16x16xi32> to vector<2x16xi32>
    %45 = vector.shape_cast %44 : vector<2x16xi32> to vector<2x16x1xi32>
    %46 = vector.broadcast %45 : vector<2x16x1xi32> to vector<2x16x16xi32>
    %47 = arith.cmpi eq, %34, %46 : vector<2x16x16xi32>
    %48 = vector.shape_cast %18 : vector<16xf32> to vector<1x1x16xf32>
    %cst_17 = arith.constant 0.000000e+00 : f32
    %49 = vector.shape_cast %48 : vector<1x1x16xf32> to vector<1x1x16xf32>
    %50 = vector.broadcast %49 : vector<1x1x16xf32> to vector<2x16x16xf32>
    %51 = vector.broadcast %cst_17 : f32 to vector<2x16x16xf32>
    %52 = arith.select %47, %50, %51 : vector<2x16x16xi1>, vector<2x16x16xf32>
    %cst_18 = arith.constant dense<0.000000e+00> : vector<2x16xf32>
    %53 = vector.multi_reduction <add>, %52, %cst_18 [2] : vector<2x16x16xf32> to vector<2x16xf32>
    %cst_19 = arith.constant 0.000000e+00 : f32
    %54 = vector.broadcast %cst_19 : f32 to vector<2x16x16xf32>
    %55 = arith.select %35, %32, %54 : vector<2x16x16xi1>, vector<2x16x16xf32>
    %cst_20 = arith.constant dense<0.000000e+00> : vector<2x16xf32>
    %56 = vector.multi_reduction <add>, %55, %cst_20 [2] : vector<2x16x16xf32> to vector<2x16xf32>
    %57 = vector.shape_cast %18 : vector<16xf32> to vector<1x16xf32>
    %58 = vector.broadcast %57 : vector<1x16xf32> to vector<2x16xf32>
    %59 = arith.subf %17, %58 : vector<2x16xf32>
    %cst_21 = arith.constant 2.000000e-06 : f32
    %60 = vector.broadcast %cst_21 : f32 to vector<2x16xf32>
    %61 = arith.mulf %60, %59 : vector<2x16xf32>
    %62 = arith.addf %56, %61 : vector<2x16xf32>
    %cst_22 = arith.constant 1.280000e-10 : f32
    %63 = vector.broadcast %cst_22 : f32 to vector<2x16xf32>
    %64 = arith.addf %62, %63 : vector<2x16xf32>
    %cst_23 = arith.constant 0.000000e+00 : f32
    %65 = vector.broadcast %cst_23 : f32 to vector<2x16xf32>
    %66 = arith.maximumf %64, %65 : vector<2x16xf32>
    %67 = math.sqrt %66 : vector<2x16xf32>
    %68 = vector.shape_cast %39 : vector<2x16x1xf32> to vector<2x16xf32>
    %69 = arith.subf %17, %53 : vector<2x16xf32>
    %cst_24 = arith.constant 2.000000e-06 : f32
    %70 = vector.broadcast %cst_24 : f32 to vector<2x16xf32>
    %71 = arith.mulf %70, %69 : vector<2x16xf32>
    %72 = arith.addf %68, %71 : vector<2x16xf32>
    %cst_25 = arith.constant 1.280000e-10 : f32
    %73 = vector.broadcast %cst_25 : f32 to vector<2x16xf32>
    %74 = arith.addf %72, %73 : vector<2x16xf32>
    %cst_26 = arith.constant 0.000000e+00 : f32
    %75 = vector.broadcast %cst_26 : f32 to vector<2x16xf32>
    %76 = arith.maximumf %74, %75 : vector<2x16xf32>
    %77 = math.sqrt %76 : vector<2x16xf32>
    %78 = arith.subf %67, %77 : vector<2x16xf32>
    %cst_27 = arith.constant 2.000000e-01 : f32
    %79 = vector.broadcast %cst_27 : f32 to vector<2x16xf32>
    %80 = arith.addf %78, %79 : vector<2x16xf32>
    %cst_28 = arith.constant 0.000000e+00 : f32
    %81 = vector.broadcast %cst_28 : f32 to vector<2x16xf32>
    %82 = arith.maximumf %80, %81 : vector<2x16xf32>
    %cst_29 = arith.constant dense<0.000000e+00> : vector<2xf32>
    %83 = vector.multi_reduction <add>, %7, %cst_29 [1] : vector<2x16xf32> to vector<2xf32>
    %84 = vector.shape_cast %83 : vector<2xf32> to vector<2x1xf32>
    %85 = arith.mulf %82, %7 : vector<2x16xf32>
    %cst_30 = arith.constant dense<0.000000e+00> : vector<2xf32>
    %86 = vector.multi_reduction <add>, %85, %cst_30 [1] : vector<2x16xf32> to vector<2xf32>
    %87 = vector.shape_cast %86 : vector<2xf32> to vector<2x1xf32>
    %88 = tpu.reciprocal %84 {approx = true} : vector<2x1xf32> -> vector<2x1xf32>
    %89 = arith.mulf %87, %88 : vector<2x1xf32>
    %c0_31 = arith.constant 0 : index
    %c0_32 = arith.constant 0 : index
    %90 = vector.load %arg6[%c0_31, %c0_32] : memref<1x1xf32, #tpu.memory_space<vmem>>, vector<1x1xf32>
    %91 = vector.shape_cast %89 : vector<2x1xf32> to vector<1x2x1xf32>
    %cst_33 = arith.constant dense<0.000000e+00> : vector<1xf32>
    %92 = vector.multi_reduction <add>, %91, %cst_33 [1, 2] : vector<1x2x1xf32> to vector<1xf32>
    %93 = vector.shape_cast %92 : vector<1xf32> to vector<1x1x1xf32>
    %94 = vector.extract %93[0, 0, 0] : f32 from vector<1x1x1xf32>
    %95 = vector.broadcast %94 : f32 to vector<1x1xf32>
    %96 = arith.addf %90, %95 : vector<1x1xf32>
    %c0_34 = arith.constant 0 : index
    %c0_35 = arith.constant 0 : index
    %97 = vector.load %arg6[%c0_34, %c0_35] : memref<1x1xf32, #tpu.memory_space<vmem>>, vector<1x1xf32>
    tpu.vector_store %arg6[%c0_34, %c0_35], %96 {strides = array<i32>} : memref<1x1xf32, #tpu.memory_space<vmem>>, vector<1x1xf32>,
    %c0_36 = arith.constant 0 : index
    %c0_37 = arith.constant 0 : index
    %98 = vector.load %arg7[%c0_36, %c0_37] : memref<16x128xf32, #tpu.memory_space<vmem>>, vector<16x128xf32>
    %99 = vector.shape_cast %7 : vector<2x16xf32> to vector<2x16x1xf32>
    %100 = vector.broadcast %99 : vector<2x16x1xf32> to vector<2x16x128xf32>
    %101 = arith.mulf %100, %16 : vector<2x16x128xf32>
    %cst_38 = arith.constant dense<0.000000e+00> : vector<16x128xf32>
    %102 = vector.multi_reduction <add>, %101, %cst_38 [0] : vector<2x16x128xf32> to vector<16x128xf32>
    %103 = arith.addf %98, %102 : vector<16x128xf32>
    %c0_39 = arith.constant 0 : index
    %c0_40 = arith.constant 0 : index
    %104 = vector.load %arg7[%c0_39, %c0_40] : memref<16x128xf32, #tpu.memory_space<vmem>>, vector<16x128xf32>
    tpu.vector_store %arg7[%c0_39, %c0_40], %103 {strides = array<i32>} : memref<16x128xf32, #tpu.memory_space<vmem>>, vector<16x128xf32>,
    %c0_41 = arith.constant 0 : index
    %c0_42 = arith.constant 0 : index
    %105 = vector.load %arg8[%c0_41, %c0_42] : memref<16x1xf32, #tpu.memory_space<vmem>>, vector<16x1xf32>
    %cst_43 = arith.constant dense<0.000000e+00> : vector<16xf32>
    %106 = vector.multi_reduction <add>, %7, %cst_43 [0] : vector<2x16xf32> to vector<16xf32>
    %107 = vector.shape_cast %106 : vector<16xf32> to vector<16x1xf32>
    %108 = arith.addf %105, %107 : vector<16x1xf32>
    %c0_44 = arith.constant 0 : index
    %c0_45 = arith.constant 0 : index
    %109 = vector.load %arg8[%c0_44, %c0_45] : memref<16x1xf32, #tpu.memory_space<vmem>>, vector<16x1xf32>
    tpu.vector_store %arg8[%c0_44, %c0_45], %108 {strides = array<i32>} : memref<16x1xf32, #tpu.memory_space<vmem>>, vector<16x1xf32>,
    %c3_i32 = arith.constant 3 : i32
    %110 = arith.cmpi eq, %arg0, %c3_i32 : i32
    %111 = arith.extui %110 : i1 to i32
    %c0_i32_46 = arith.constant 0 : i32
    %112 = arith.cmpi ne, %111, %c0_i32_46 : i32
    scf.if %112 {
      %c0_47 = arith.constant 0 : index
      %c0_48 = arith.constant 0 : index
      %113 = vector.load %arg8[%c0_47, %c0_48] : memref<16x1xf32, #tpu.memory_space<vmem>>, vector<16x1xf32>
      %114 = vector.shape_cast %113 : vector<16x1xf32> to vector<1x16x1xf32>
      %cst_49 = arith.constant dense<0.000000e+00> : vector<1xf32>
      %115 = vector.multi_reduction <add>, %114, %cst_49 [1, 2] : vector<1x16x1xf32> to vector<1xf32>
      %116 = vector.shape_cast %115 : vector<1xf32> to vector<1x1x1xf32>
      %117 = vector.extract %116[0, 0, 0] : f32 from vector<1x1x1xf32>
      %c0_50 = arith.constant 0 : index
      %c0_51 = arith.constant 0 : index
      %118 = vector.load %arg7[%c0_50, %c0_51] : memref<16x128xf32, #tpu.memory_space<vmem>>, vector<16x128xf32>
      %cst_52 = arith.constant 9.99999974E-6 : f32
      %119 = vector.broadcast %cst_52 : f32 to vector<16x1xf32>
      %120 = arith.addf %113, %119 : vector<16x1xf32>
      %121 = tpu.reciprocal %120 {approx = true} : vector<16x1xf32> -> vector<16x1xf32>
      %122 = vector.broadcast %121 : vector<16x1xf32> to vector<16x128xf32>
      %123 = arith.mulf %118, %122 : vector<16x128xf32>
      %124 = math.absf %8 : vector<16x128xf32>
      %cst_53 = arith.constant dense<0xFF800000> : vector<16xf32>
      %125 = vector.multi_reduction <maximumf>, %124, %cst_53 [1] : vector<16x128xf32> to vector<16xf32>
      %126 = vector.shape_cast %125 : vector<16xf32> to vector<16x1xf32>
      %cst_54 = arith.constant 0.000000e+00 : f32
      %127 = vector.broadcast %cst_54 : f32 to vector<16x1xf32>
      %128 = arith.cmpf oeq, %126, %127 : vector<16x1xf32>
      %cst_55 = arith.constant 0.899999976 : f32
      %129 = vector.broadcast %cst_55 : f32 to vector<16x128xf32>
      %130 = arith.mulf %129, %8 : vector<16x128xf32>
      %cst_56 = arith.constant 1.000000e-01 : f32
      %131 = vector.broadcast %cst_56 : f32 to vector<16x128xf32>
      %132 = arith.mulf %131, %123 : vector<16x128xf32>
      %133 = arith.addf %130, %132 : vector<16x128xf32>
      %134 = vector.shape_cast %128 : vector<16x1xi1> to vector<16x1xi1>
      %135 = vector.broadcast %134 : vector<16x1xi1> to vector<16x128xi1>
      %136 = arith.select %135, %123, %133 : vector<16x128xi1>, vector<16x128xf32>
      %cst_57 = arith.constant 0.000000e+00 : f32
      %137 = vector.broadcast %cst_57 : f32 to vector<16x1xf32>
      %138 = arith.cmpf ogt, %113, %137 : vector<16x1xf32>
      %139 = vector.shape_cast %138 : vector<16x1xi1> to vector<16x1xi1>
      %140 = vector.broadcast %139 : vector<16x1xi1> to vector<16x128xi1>
      %141 = arith.select %140, %136, %8 : vector<16x128xi1>, vector<16x128xf32>
      %c0_58 = arith.constant 0 : index
      %c0_59 = arith.constant 0 : index
      %142 = vector.load %arg5[%c0_58, %c0_59] : memref<16x128xf32, #tpu.memory_space<vmem>>, vector<16x128xf32>
      tpu.vector_store %arg5[%c0_58, %c0_59], %141 {strides = array<i32>} : memref<16x128xf32, #tpu.memory_space<vmem>>, vector<16x128xf32>,
      %c0_60 = arith.constant 0 : index
      %c0_61 = arith.constant 0 : index
      %143 = vector.load %arg6[%c0_60, %c0_61] : memref<1x1xf32, #tpu.memory_space<vmem>>, vector<1x1xf32>
      %cst_62 = arith.constant 1.250000e-01 : f32
      %144 = vector.broadcast %cst_62 : f32 to vector<1x1xf32>
      %145 = arith.mulf %143, %144 : vector<1x1xf32>
      %cst_63 = arith.constant 0.000000e+00 : f32
      %146 = arith.cmpf ogt, %117, %cst_63 : f32
      %cst_64 = arith.constant 0.000000e+00 : f32
      %147 = vector.broadcast %cst_64 : f32 to vector<1x1xf32>
      %148 = arith.select %146, %145, %147 : vector<1x1xf32>
      %c0_65 = arith.constant 0 : index
      %c0_66 = arith.constant 0 : index
      %149 = vector.load %arg4[%c0_65, %c0_66] : memref<1x1xf32, #tpu.memory_space<vmem>>, vector<1x1xf32>
      tpu.vector_store %arg4[%c0_65, %c0_66], %148 {strides = array<i32>} : memref<1x1xf32, #tpu.memory_space<vmem>>, vector<1x1xf32>,
    } else {
    }
    return
  }
  func.func @transform_0(%arg0: i32) -> (i32, i32, i32) {
    %c0_i32 = arith.constant 0 : i32
    %c0_i32_0 = arith.constant 0 : i32
    %c0_i32_1 = arith.constant 0 : i32
    return %arg0, %c0_i32, %c0_i32_0 : i32, i32, i32
  }
  func.func @transform_1(%arg0: i32) -> (i32, i32) {
    %c0_i32 = arith.constant 0 : i32
    %c0_i32_0 = arith.constant 0 : i32
    %c0_i32_1 = arith.constant 0 : i32
    return %c0_i32, %c0_i32_0 : i32, i32
  }
  func.func @transform_2(%arg0: i32) -> (i32, i32) {
    %c0_i32 = arith.constant 0 : i32
    %c0_i32_0 = arith.constant 0 : i32
    %c0_i32_1 = arith.constant 0 : i32
    return %c0_i32, %c0_i32_0 : i32, i32
  }
  func.func @transform_3(%arg0: i32) -> (i32, i32) {
    %c0_i32 = arith.constant 0 : i32
    %c0_i32_0 = arith.constant 0 : i32
    %c0_i32_1 = arith.constant 0 : i32
    return %c0_i32, %c0_i32_0 : i32, i32
  }
  func.func @transform_4(%arg0: i32) -> (i32, i32) {
    %c0_i32 = arith.constant 0 : i32
    %c0_i32_0 = arith.constant 0 : i32
    %c0_i32_1 = arith.constant 0 : i32
    return %c0_i32, %c0_i32_0 : i32, i32
  }
}

</mosaic_0001>

<bundles_post_ra>
// kernel: tpu_custom_call.1
= control target key start
LH: loop header
LB: loop body
LE: loop exit
PB: predicated region body
PF: predicated region fallthrough
CT: control target
= control target key end

     0   :  { %10 = vsyncpa [#allocation6], 0  ;;  %s3271_s0 = inlined_call_operand.hbm [shape: f32[8,16,128], index: 0, kind: input, shape index: {}]   ;;  %s3272_s1 = inlined_call_operand.hbm [shape: f32[8,16], index: 1, kind: input, shape index: {}]   ;;  %s3273_s2 = inlined_call_operand.hbm [shape: f32[16,128], index: 2, kind: input, shape index: {}]   ;;  %s3274_s3 = inlined_call_operand.hbm [shape: f32[1,1], index: 3, kind: output, shape index: {0}]   ;;  %s3275_s4 = inlined_call_operand.hbm [shape: f32[16,128], index: 4, kind: output, shape index: {1}]  }
   0x1   :  { %12 = vsyncpa [#allocation6 + $0x1], 0 }
   0x2   :  { %13 = vsyncpa [#allocation9], 0 }
   0x3   :  { %14 = vsyncpa [#allocation7], 0 }
   0x4   :  { %15 = vsyncpa [#allocation13], 0  ;;  %s2490_s15 = smov 0   ;;  %s2492_s16 = smov 0  }
   0x5   :  { %s2494_s17 = smov 0   ;;  %s2496_s18 = smov 0  }
   0x6 LB: > { %s2509_s19 = sadd.s32 4294967295, %s2451_s18   ;;  %s2512_s20 = sadd.s32 1, %s2451_s18   ;;  %s2451_s18 = sphi %s2496_s18, %s3294_s18   ;;  %s2447_s17 = sphi %s2494_s17, %s3293_s17   ;;  %s2443_s16 = sphi %s2492_s16, %s3292_s16   ;;  %s2439_s15 = sphi %s2490_s15, %s3291_s15  }
   0x7   : > { %s25_s21 = ssub.s32 %s2451_s18, %s2512_s20  ;;  %s28_s22 = sadd.s32 1, %s2447_s17 }
   0x8   : > { %p26_p0 = scmp.eq.s32.totalorder %s25_s21, 0  ;;  %p35_p1 = scmp.ne.s32.totalorder %s2447_s17, %s2443_s16 }
   0x9   : > { %p36_p2 = scmp.eq.s32.totalorder %s2451_s18, 0  ;;  %p41_p3 = scmp.ne.s32.totalorder %s2443_s16, %s2439_s15 }
   0xa   : > { %s2522_s23 = scalar_select %p26_p0, %s2447_s17, %s28_s22  }
   0xb   : > { %p2524_p4 = por %p36_p2, %p35_p1  ;;  %p3276_p5 = scmp.eq.s32.totalorder %s2509_s19, 0 }
   0xc   : > { %p2101_p6 = scmp.ge.s32.totalorder %s2451_s18, 1  ;;  %p136_p7 = scmp.lt.s32.totalorder %s2451_s18, 5 }
   0xd   : > { %p2533_p8 = por %p3276_p5, %p41_p3  ;;  %s2453_s27 = smov [#allocation8]  }
   0xe   : > { %p2538_p10 = pnand %p2101_p6, %p136_p7  ;;  %s149_s28 = sshll.u32 %s2453_s27, 4  ;;  %s150_s28 = int_to_ptr.vmem [resolvable:$true] %s149_s28 }
   0xf   : > { %s3281_s25 = scalar_select %p2533_p8, 1, 0 }
  0x10   : > { %s3282_s26 = scalar_select %p2538_p10, 1, 0 }
  0x11   : > { %p2168_p11 = pneg %p2538_p10  ;;  %p2181_p12 = scmp.lt.s32.totalorder %s2451_s18, 4 }
  0x12   : > { %s2454_s30 = smov [#allocation10]   ;;  %s2267_s9 = scalar_lea.hbm %s3272_s1, 128 }
  0x13   : > { %p2547_p13 = pnand %p2168_p11, %p3276_p5  ;;  %s159_s5 = sshll.u32 %s2454_s30, 4  ;;  %s2557_s5 = int_to_ptr.vmem [resolvable:$true] %s159_s5 }
  0x14   : > { %p2553_p0 = pnand %p2181_p12, %p2524_p4  ;;  %p2268_p1 = scmp.ne.s32.totalorder %s3272_s1, %s2267_s9 }
  0x15   : > { %p2269_p2 = pneg %p2547_p13  ;;  %p2274_p4 = scmp.lt.u32.totalorder %s2267_s9, %s3272_s1 }
  0x16   : > { %s3284_s6 = scalar_select %p2553_p0, 1, 0 }
  0x17   : > { %p2270_p3 = pnand %p2269_p2, %p2268_p1 }
  0x19   : > { %p2271_p6 = pneg %p2270_p3 }
  0x1b   : > { %p2276_p7 = pnand %p2274_p4, %p2271_p6 }
  0x1d   : > { %2279 = shalt.err (!%p2276_p7)
}
  0x1e   : > { %s2280_s14 = scalar_lea.vmem %s150_s28, 128  ;;  %p2288_p5 = scmp.lt.s32.totalorder %s150_s28, %s150_s28 }
  0x1f   : > { %p2281_p11 = scmp.ne.s32.totalorder %s150_s28, %s2280_s14  ;;  %p2289_p8 = scmp.lt.s32.totalorder %s2280_s14, %s2280_s14 }
  0x21   : > { %p2283_p12 = pnand %p2281_p11, %p2269_p2  ;;  %p2290_p10 = por %p2289_p8, %p2288_p5 }
  0x23   : > { %p2284_p9 = pneg %p2283_p12 }
  0x25   : > { %p2291_p0 = pnand %p2290_p10, %p2284_p9 }
  0x27   : > { %2294 = shalt.err (!%p2291_p0)
}
  0x28   : > { %2171 = dma.hbm_to_vmem [thread:$0]  (!%p2547_p13), %s3272_s1, 128, %s150_s28, [#allocation9]  }
  0x29   : > { %s2295_s27 = scalar_lea.hbm %s3273_s2, 256 }
  0x2a   : > { %p2296_p1 = scmp.ne.s32.totalorder %s3273_s2, %s2295_s27  ;;  %p2302_p9 = scmp.lt.u32.totalorder %s2295_s27, %s3273_s2 }
  0x2c   : > { %p2298_p5 = pnand %p2296_p1, %p2269_p2 }
  0x2e   : > { %p2299_p8 = pneg %p2298_p5 }
  0x30   : > { %p2304_p10 = pnand %p2302_p9, %p2299_p8 }
  0x32   : > { %2307 = shalt.err (!%p2304_p10)
}
  0x33   : > { %s2308_s28 = scalar_lea.vmem %s2557_s5, 256  ;;  %p2316_p4 = scmp.lt.s32.totalorder %s2557_s5, %s2557_s5 }
  0x34   : > { %p2309_p0 = scmp.ne.s32.totalorder %s2557_s5, %s2308_s28  ;;  %p2317_p7 = scmp.lt.s32.totalorder %s2308_s28, %s2308_s28 }
  0x36   : > { %p2311_p3 = pnand %p2309_p0, %p2269_p2  ;;  %p2318_p11 = por %p2317_p7, %p2316_p4 }
  0x38   : > { %p2312_p6 = pneg %p2311_p3 }
  0x3a   : > { %p2319_p12 = pnand %p2318_p11, %p2312_p6 }
  0x3c   : > { %2322 = shalt.err (!%p2319_p12)
}
  0x3d   : > { %s2455_s10 = smov 128   ;;  %s2456_s11 = smov 8  }
  0x3e   : > { %2174 = dma.hbm_to_vmem [thread:$0]  (!%p2547_p13), %s3273_s2, 256, %s2557_s5, [#allocation9], %s2455_s10, %s2455_s10, %s2456_s11  }
  0x3f   : > { %s173_s14 = sand.u32 1, %s2447_s17   ;;  %s2123_s15 = sshll.u32 %s2451_s18, 9 }
  0x40   : > { %s2105_s21 = sshll.u32 %s173_s14, 5  ;;  %s2614_s27 = scalar_lea.hbm %s3271_s0, %s2123_s15 }
  0x41   : > { %s177_s29 = scalar_lea.vmem [#allocation5], %s2105_s21  ;;  %s2618_s7 = scalar_lea.sflag [#allocation6], %s173_s14 }
  0x42   : > { %s185_s30 = sshll.u32 %s177_s29, 4  ;;  %s2323_s8 = scalar_lea.hbm %s2614_s27, 512  ;;  %s2616_s30 = int_to_ptr.vmem [resolvable:$true] %s185_s30 }
  0x43   : > { %p2324_p13 = scmp.ne.s32.totalorder %s2614_s27, %s2323_s8  ;;  %p3285_p2 = scmp.ne.s32.totalorder %s3284_s6, 0 }
  0x44   : > { %s2328_s9 = scalar_lea.hbm %s3271_s0, 2048  ;;  %p2329_p9 = scmp.lt.u32.totalorder %s2614_s27, %s3271_s0 }
  0x45   : > { %p2325_p1 = pneg %p3285_p2  ;;  %p2330_p10 = scmp.lt.u32.totalorder %s2328_s9, %s2323_s8 }
  0x46   : > { %p2332_p3 = scmp.lt.u32.totalorder %s2323_s8, %s2614_s27 }
  0x47   : > { %p2326_p5 = pnand %p2325_p1, %p2324_p13  ;;  %p2331_p0 = por %p2330_p10, %p2329_p9 }
  0x49   : > { %p2327_p8 = pneg %p2326_p5  ;;  %p2333_p6 = por %p2332_p3, %p2331_p0 }
  0x4b   : > { %p2334_p4 = pnand %p2333_p6, %p2327_p8 }
  0x4d   : > { %2337 = shalt.err (!%p2334_p4)
}
  0x4e   : > { %s2338_s13 = scalar_lea.vmem %s2616_s30, 512  ;;  %s2457_s14 = smov [#allocation5]  }
  0x4f   : > { %p2339_p7 = scmp.ne.s32.totalorder %s2616_s30, %s2338_s13  ;;  %s2343_s15 = sshll.u32 %s2457_s14, 4  ;;  %s2344_s15 = int_to_ptr.vmem [resolvable:$false] %s2343_s15 }
  0x50   : > { %s2345_s21 = scalar_lea.vmem %s2344_s15, 1024  ;;  %p2346_p13 = scmp.lt.s32.totalorder %s2616_s30, %s2344_s15 }
  0x51   : > { %p2341_p11 = pnand %p2339_p7, %p2325_p1  ;;  %p2347_p5 = scmp.lt.s32.totalorder %s2345_s21, %s2338_s13 }
  0x53   : > { %p2342_p12 = pneg %p2341_p11  ;;  %p2348_p9 = por %p2347_p5, %p2346_p13 }
  0x55   : > { %p2349_p10 = pnand %p2348_p9, %p2342_p12 }
  0x57   : > { %2352 = shalt.err (!%p2349_p10)
}
  0x58   : > { %2178 = dma.hbm_to_vmem [thread:$0]  (!%p3285_p2), %s2614_s27, 512, %s2616_s30, %s2618_s7, %s2455_s10, %s2455_s10, %s2456_s11  }
  0x59   : > { %p3286_p1 = scmp.ne.s32.totalorder %s3282_s26, 0 }
  0x5a   : > { %s199_s22 = sand.u32 (!%p3286_p1), 1, %s2443_s16   ;;  %p3287_p8 = scmp.ne.s32.totalorder (!%p3286_p1), %s3281_s25, 0 }
  0x5b   : > { %197 = sbr.rel (%p3286_p1) target bundleno = 2206 (0x89e), region = 32  ;;  %s2110_s24 = sshll.u32 (!%p3286_p1), %s199_s22, 5 }
  0x5c   : > { %s200_s29 = scalar_lea.sflag (!%p3286_p1), [#allocation6], %s199_s22  ;;  %s203_s8 = scalar_lea.vmem (!%p3286_p1), [#allocation5], %s2110_s24 }
  0x62   : > { %2422 = dma.done.wait (%p3287_p8), %s200_s29, 512  }
  0x63   : > { %2424 = vsyncadd (%p3287_p8), %s200_s29, 4294966784  ;;  %p3288_p0 = scmp.eq.s32.totalorder %s2509_s19, 0 }
  0x65   : > { %2426 = dma.done.wait (%p3288_p0), [#allocation9], 384   ;;  %p3289_p3 = pmov %p3288_p0 }
  0x66   : > { %p3290_p2 = scmp.ne.s32.totalorder %s2509_s19, 0 }
  0x67   : > { %2428 = vsyncadd (%p3289_p3), [#allocation9], 4294966912  ;;  %vm236_vm0 = vcmask (!%p3290_p2), 0   ;;  %vm240_vm1 = vcmask (!%p3290_p2), 7168   ;;  %v2458_v0 = vmov (!%p3290_p2), 0.0  }
  0x68   : > { %235 = sbr.rel (%p3290_p2) target bundleno = 111 (0x6f), region = 48  ;;  %237 = vst.msk [vmem:[#allocation2] sm:$0x1] (!%p3290_p2), %vm236_vm0, %v2458_v0  ;;  %238 = vst [vmem:[#allocation3] sm:$0xff] (!%p3290_p2), %v2458_v0 }
  0x69   : > { %239 = vst [vmem:[#allocation3 + $0x8] sm:$0xff] (!%p3290_p2), %v2458_v0  ;;  %241 = vst.msk [vmem:[#allocation4] sm:$0xff] (!%p3290_p2), %vm240_vm1, %v2458_v0 }
  0x6a   : > { %242 = vst.msk [vmem:[#allocation4 + $0x8] sm:$0xff] (!%p3290_p2), %vm240_vm1, %v2458_v0 }
  0x6f PF: > { %v243_v1 = vld [vmem:[%s203_s8] sm:$0xff]  ;;  %v244_v2 = vld [vmem:[%s203_s8 + $0x8] sm:$0xff]  ;;  %v245_v3 = vld [vmem:[%s203_s8 + $0x10] sm:$0xff]  ;;  %v389_v30 = vlaneseq  ;;  %v2459_v38 = vmov 0   ;;  %vm1205_vm2 = vcmask 130112   ;;  %vm1486_vm3 = vcmask 1041409  }
  0x70   : > { %v252_v4 = vmul.f32 %v243_v1, %v243_v1  ;;  %v253_v5 = vmul.f32 %v244_v2, %v244_v2  ;;  %v246_v6 = vld [vmem:[%s203_s8 + $0x18] sm:$0xff]  ;;  %v254_v7 = vmul.f32 %v245_v3, %v245_v3  ;;  %v2662_v9 = vld [vmem:[#allocation10] sm:$0xff]  ;;  %v2664_v10 = vld [vmem:[#allocation10 + $0x8] sm:$0xff]  ;;  %2232 = vset.pattern.permute.xlu0 %v2459_v38  ;;  %2231 = vset.pattern.permute.xlu1 %v2459_v38  ;;  %vm1488_vm4 = vcmask 1042434   ;;  %s2114_s25 = sshll.u32 %s2509_s19, 1  ;;  %p2115_p6 = scmp.ne.s32.totalorder %s2509_s19, 3 }
  0x71   : > { %v255_v8 = vmul.f32 %v246_v6, %v246_v6  ;;  %v2140_v11 = vpack.c.bf16 %v2664_v10, %v2662_v9  ;;  %v289_v12 = vmul.f32 %v2664_v10, %v2664_v10  ;;  %v288_v13 = vmul.f32 %v2662_v9, %v2662_v9  ;;  %s248_s26 = scalar_lea.vmem [#allocation8], %s2114_s25 }
  0x72   : > { %256 = vadd.xlane.f32.xlu0 %v252_v4  ;;  %258 = vadd.xlane.f32.xlu1 %v253_v5  ;;  %v2685_v31 = vshrl.u32 %v389_v30, 7  ;;  %vm1490_vm5 = vcmask 1043459   ;;  %vm1492_vm6 = vcmask 1044484   ;;  %vm1494_vm7 = vcmask 1045509  }
  0x73   : > { %2141 = vmatprep.subr.bf16.mxu0 %v2140_v11  ;;  %2144 = vmatprep.subr.bf16.mxu1 %v2140_v11  ;;  %vm1496_vm8 = vcmask 1046534   ;;  %vm1498_vm9 = vcmask 1047559   ;;  %vm1529_vm11 = vcmask 130048  }
  0x74   : > { %2143 = vmatpush3.bf16.xpose.msra.mxu0 %v2140_v11  ;;  %2145 = vmatpush3.bf16.xpose.msra.mxu1 %v2140_v11  ;;  %v2688_v32 = vsub.s32 0, %v2685_v31  ;;  %v2697_v37 = vsub.s32 1, %v2685_v31  ;;  %v2704_v44 = vsub.s32 2, %v2685_v31  ;;  %v2707_v45 = vsub.s32 3, %v2685_v31 }
  0x75   : > { %v2710_v46 = vsub.s32 4, %v2685_v31  ;;  %v2713_v47 = vsub.s32 5, %v2685_v31  ;;  %v2717_v49 = vsub.s32 6, %v2685_v31  ;;  %v2720_v50 = vsub.s32 7, %v2685_v31 }
  0x76   : > { %260 = vadd.xlane.f32.xlu0 %v254_v7  ;;  %262 = vadd.xlane.f32.xlu1 %v255_v8 }
  0x7a   : > { %292 = vadd.xlane.f32.xlu1 %v289_v12  ;;  %290 = vadd.xlane.f32.xlu0 %v288_v13 }
  0xff   : > { %v257_v14 = vpop.xlane.xlu0 %256  ;;  %v259_v15 = vpop.xlane.xlu1 %258 }
 0x100   : > { %v264_v16 = vmax.f32 %v257_v14, 1e-24  ;;  %v265_v17 = vmax.f32 %v259_v15, 1e-24 }
 0x102   : > { %2233 = vrsqrt.f32 %v264_v16 }
 0x103   : > { %2235 = vrsqrt.f32 %v265_v17  ;;  %v261_v18 = vpop.xlane.xlu0 %260  ;;  %v263_v19 = vpop.xlane.xlu1 %262 }
 0x104   : > { %v266_v20 = vmax.f32 %v261_v18, 1e-24  ;;  %v267_v21 = vmax.f32 %v263_v19, 1e-24 }
 0x106   : > { %2237 = vrsqrt.f32 %v266_v20 }
 0x107   : > { %2239 = vrsqrt.f32 %v267_v21  ;;  %v293_v18 = vpop.xlane.xlu1 %292  ;;  %v291_v19 = vpop.xlane.xlu0 %290 }
 0x108   : > { %v2786_v20 = vadd.f32 1.0, %v293_v18 }
 0x10c   : > { %v2234_v22 = vpop.eup %2233 }
 0x10d   : > { %v2236_v23 = vpop.eup %2235  ;;  %v2672_v24 = vmul.f32 %v2234_v22, %v243_v1 }
 0x10e   : > { %v2674_v25 = vmul.f32 %v2236_v23, %v244_v2 }
 0x10f   : > { %2134 = vmatprep.mubr.f32.mxu0 %v2672_v24 }
 0x110   : > { %v2238_v26 = vpop.eup %2237  ;;  %2135 = vmatmul.mubr.f32.vlgmr.msra.gmra.mrb[0].mxu0 %v2674_v25 }
 0x111   : > { %v2240_v27 = vpop.eup %2239  ;;  %v2678_v28 = vmul.f32 %v2238_v26, %v245_v3 }
 0x112   : > { %v2680_v29 = vmul.f32 %v2240_v27, %v246_v6 }
 0x113   : > { %2137 = vmatprep.mubr.f32.mxu1 %v2678_v28 }
 0x114   : > { %2138 = vmatmul.mubr.f32.vlgmr.msra.gmra.mrb[0].mxu1 %v2680_v29 }
 0x1e3   : > { %v2136_v33 = vpop.f32.mrb[0].mxu0 }
 0x1e4   : > { %v2690_v34 = vmul.f32 2.0, %v2136_v33  ;;  %v2692_v35 = vpop.f32.mrb[1].mxu0 }
 0x1e5   : > { %v381_v5 = vmul.f32 2.0, %v2692_v35 }
 0x1e6   : > { %v480_v36 = vrot.slane %v2690_v34, %v2688_v32  ;;  %v491_v43 = vrot.slane %v2690_v34, %v2697_v37  ;;  %v502_v58 = vrot.slane %v2690_v34, %v2704_v44  ;;  %v513_v60 = vrot.slane %v2690_v34, %v2707_v45 }
 0x1e7   : > { %v2139_v39 = vpop.f32.mrb[0].mxu1  ;;  %v524_v62 = vrot.slane %v2690_v34, %v2710_v46  ;;  %v535_v0 = vrot.slane %v2690_v34, %v2713_v47  ;;  %v546_v2 = vrot.slane %v2690_v34, %v2717_v49  ;;  %v557_v4 = vrot.slane %v2690_v34, %v2720_v50 }
 0x1e8   : > { %486 = vbcast.lane.b32.xlu1 %v480_v36, 264  ;;  %482 = vbcast.lane.b32.xlu0 %v480_v36, 256  ;;  %v384_v40 = vmul.f32 2.0, %v2139_v39  ;;  %v370_v41 = vpop.f32.mrb[1].mxu1  ;;  %v392_v7 = vrot.slane %v381_v5, %v2688_v32  ;;  %v403_v8 = vrot.slane %v381_v5, %v2697_v37  ;;  %v414_v13 = vrot.slane %v381_v5, %v2704_v44 }
 0x1e9   : > { %v2699_v42 = vmul.f32 2.0, %v370_v41  ;;  %v425_v14 = vrot.slane %v381_v5, %v2707_v45  ;;  %v436_v15 = vrot.slane %v381_v5, %v2710_v46  ;;  %v447_v16 = vrot.slane %v381_v5, %v2713_v47 }
 0x1ea   : > { %v656_v48 = vrot.slane %v384_v40, %v2688_v32  ;;  %v667_v57 = vrot.slane %v384_v40, %v2697_v37  ;;  %v678_v59 = vrot.slane %v384_v40, %v2704_v44  ;;  %v689_v61 = vrot.slane %v384_v40, %v2707_v45 }
 0x1eb   : > { %v2724_v51 = vrot.slane %v2699_v42, %v2704_v44  ;;  %v2728_v52 = vrot.slane %v2699_v42, %v2707_v45  ;;  %v2732_v53 = vrot.slane %v2699_v42, %v2710_v46  ;;  %v2736_v54 = vrot.slane %v2699_v42, %v2713_v47 }
 0x1ec   : > { %497 = vbcast.lane.b32.xlu1 %v491_v43, 264  ;;  %493 = vbcast.lane.b32.xlu0 %v491_v43, 256  ;;  %v2740_v55 = vrot.slane %v2699_v42, %v2717_v49  ;;  %v2744_v56 = vrot.slane %v2699_v42, %v2720_v50  ;;  %v700_v63 = vrot.slane %v384_v40, %v2710_v46  ;;  %v2792_v34 = vadd.f32 1.0, %v291_v19 }
 0x1ed   : > { %v711_v1 = vrot.slane %v384_v40, %v2713_v47  ;;  %v722_v3 = vrot.slane %v384_v40, %v2717_v49  ;;  %v733_v6 = vrot.slane %v384_v40, %v2720_v50  ;;  %v568_v11 = vrot.slane %v2699_v42, %v2688_v32 }
 0x1ee   : > { %v579_v12 = vrot.slane %v2699_v42, %v2697_v37  ;;  %v458_v17 = vrot.slane %v381_v5, %v2717_v49  ;;  %v469_v23 = vrot.slane %v381_v5, %v2720_v50 }
 0x1f0   : > { %662 = vbcast.lane.b32.xlu1 %v656_v48, 264  ;;  %658 = vbcast.lane.b32.xlu0 %v656_v48, 256 }
 0x1f4   : > { %673 = vbcast.lane.b32.xlu1 %v667_v57, 264  ;;  %669 = vbcast.lane.b32.xlu0 %v667_v57, 256 }
 0x1f8   : > { %508 = vbcast.lane.b32.xlu1 %v502_v58, 264  ;;  %504 = vbcast.lane.b32.xlu0 %v502_v58, 256 }
 0x1fc   : > { %684 = vbcast.lane.b32.xlu1 %v678_v59, 264  ;;  %680 = vbcast.lane.b32.xlu0 %v678_v59, 256 }
 0x200   : > { %519 = vbcast.lane.b32.xlu1 %v513_v60, 264  ;;  %515 = vbcast.lane.b32.xlu0 %v513_v60, 256 }
 0x204   : > { %695 = vbcast.lane.b32.xlu1 %v689_v61, 264  ;;  %691 = vbcast.lane.b32.xlu0 %v689_v61, 256 }
 0x208   : > { %530 = vbcast.lane.b32.xlu1 %v524_v62, 264  ;;  %526 = vbcast.lane.b32.xlu0 %v524_v62, 256 }
 0x20c   : > { %706 = vbcast.lane.b32.xlu1 %v700_v63, 264  ;;  %702 = vbcast.lane.b32.xlu0 %v700_v63, 256 }
 0x210   : > { %541 = vbcast.lane.b32.xlu1 %v535_v0, 264  ;;  %537 = vbcast.lane.b32.xlu0 %v535_v0, 256 }
 0x214   : > { %717 = vbcast.lane.b32.xlu1 %v711_v1, 264  ;;  %713 = vbcast.lane.b32.xlu0 %v711_v1, 256 }
 0x218   : > { %552 = vbcast.lane.b32.xlu1 %v546_v2, 264  ;;  %548 = vbcast.lane.b32.xlu0 %v546_v2, 256 }
 0x21c   : > { %728 = vbcast.lane.b32.xlu1 %v722_v3, 264  ;;  %724 = vbcast.lane.b32.xlu0 %v722_v3, 256 }
 0x220   : > { %563 = vbcast.lane.b32.xlu1 %v557_v4, 264  ;;  %559 = vbcast.lane.b32.xlu0 %v557_v4, 256 }
 0x224   : > { %739 = vbcast.lane.b32.xlu1 %v733_v6, 264  ;;  %735 = vbcast.lane.b32.xlu0 %v733_v6, 256 }
 0x228   : > { %398 = vbcast.lane.b32.xlu1 %v392_v7, 264  ;;  %394 = vbcast.lane.b32.xlu0 %v392_v7, 256 }
 0x22c   : > { %405 = vbcast.lane.b32.xlu1 %v403_v8, 256  ;;  %570 = vbcast.lane.b32.xlu0 %v568_v11, 256 }
 0x230   : > { %409 = vbcast.lane.b32.xlu1 %v403_v8, 264  ;;  %581 = vbcast.lane.b32.xlu0 %v579_v12, 256 }
 0x234   : > { %574 = vbcast.lane.b32.xlu1 %v568_v11, 264  ;;  %416 = vbcast.lane.b32.xlu0 %v414_v13, 256 }
 0x238   : > { %585 = vbcast.lane.b32.xlu1 %v579_v12, 264  ;;  %592 = vbcast.lane.b32.xlu0 %v2724_v51, 256 }
 0x23c   : > { %420 = vbcast.lane.b32.xlu1 %v414_v13, 264  ;;  %427 = vbcast.lane.b32.xlu0 %v425_v14, 256 }
 0x240   : > { %596 = vbcast.lane.b32.xlu1 %v2724_v51, 264  ;;  %603 = vbcast.lane.b32.xlu0 %v2728_v52, 256 }
 0x244   : > { %431 = vbcast.lane.b32.xlu1 %v425_v14, 264  ;;  %438 = vbcast.lane.b32.xlu0 %v436_v15, 256 }
 0x248   : > { %607 = vbcast.lane.b32.xlu1 %v2728_v52, 264  ;;  %614 = vbcast.lane.b32.xlu0 %v2732_v53, 256 }
 0x24c   : > { %442 = vbcast.lane.b32.xlu1 %v436_v15, 264  ;;  %449 = vbcast.lane.b32.xlu0 %v447_v16, 256 }
 0x250   : > { %618 = vbcast.lane.b32.xlu1 %v2732_v53, 264  ;;  %625 = vbcast.lane.b32.xlu0 %v2736_v54, 256 }
 0x254   : > { %453 = vbcast.lane.b32.xlu1 %v447_v16, 264  ;;  %460 = vbcast.lane.b32.xlu0 %v458_v17, 256 }
 0x258   : > { %629 = vbcast.lane.b32.xlu1 %v2736_v54, 264  ;;  %636 = vbcast.lane.b32.xlu0 %v2740_v55, 256 }
 0x25a   : > { %v487_v21 = vpop.permute.xlu1 %486  ;;  %v483_v22 = vpop.permute.xlu0 %482 }
 0x25b   : > { %v822_v26 = vsub.f32 %v2786_v20, %v487_v21  ;;  %v821_v40 = vsub.f32 %v2792_v34, %v483_v22 }
 0x25c   : > { %464 = vbcast.lane.b32.xlu1 %v458_v17, 264  ;;  %471 = vbcast.lane.b32.xlu0 %v469_v23, 256 }
 0x25d   : > { %v886_v35 = vmax.f32 %v822_v26, 0.0  ;;  %v885_v45 = vmax.f32 %v821_v40, 0.0 }
 0x25e   : > { %v498_v27 = vpop.permute.xlu1 %497  ;;  %v494_v33 = vpop.permute.xlu0 %493 }
 0x25f   : > { %v824_v36 = vsub.f32 %v2786_v20, %v498_v27  ;;  %v823_v46 = vsub.f32 %v2792_v34, %v494_v33 }
 0x260   : > { %640 = vbcast.lane.b32.xlu1 %v2740_v55, 264  ;;  %647 = vbcast.lane.b32.xlu0 %v2744_v56, 256 }
 0x261   : > { %v888_v41 = vmax.f32 %v824_v36, 0.0  ;;  %v887_v51 = vmax.f32 %v823_v46, 0.0 }
 0x262   : > { %v663_v38 = vpop.permute.xlu1 %662  ;;  %v659_v39 = vpop.permute.xlu0 %658 }
 0x263   : > { %v854_v42 = vsub.f32 %v2786_v20, %v663_v38  ;;  %v853_v52 = vsub.f32 %v2792_v34, %v659_v39 }
 0x264   : > { %475 = vbcast.lane.b32.xlu1 %v469_v23, 264  ;;  %1056 = vperm.xlu0 %2232, %v886_v35  }
 0x265   : > { %v918_v47 = vmax.f32 %v854_v42, 0.0 }
 0x266   : > { %v674_v43 = vpop.permute.xlu1 %673  ;;  %v670_v44 = vpop.permute.xlu0 %669 }
 0x267   : > { %v856_v48 = vsub.f32 %v2786_v20, %v674_v43  ;;  %v855_v58 = vsub.f32 %v2792_v34, %v670_v44 }
 0x268   : > { %651 = vbcast.lane.b32.xlu1 %v2744_v56, 264  ;;  %1062 = vperm.xlu0 %2232, %v888_v41   ;;  %v917_v56 = vmax.f32 %v853_v52, 0.0 }
 0x269   : > { %v920_v53 = vmax.f32 %v856_v48, 0.0  ;;  %v919_v63 = vmax.f32 %v855_v58, 0.0 }
 0x26a   : > { %v509_v49 = vpop.permute.xlu1 %508  ;;  %v505_v50 = vpop.permute.xlu0 %504 }
 0x26b   : > { %v826_v54 = vsub.f32 %v2786_v20, %v509_v49  ;;  %v825_v0 = vsub.f32 %v2792_v34, %v505_v50 }
 0x26c   : > { %1152 = vperm.xlu0 %2232, %v918_v47   ;;  %1053 = vperm.xlu1 %2231, %v885_v45  }
 0x26d   : > { %v890_v59 = vmax.f32 %v826_v54, 0.0  ;;  %v889_v5 = vmax.f32 %v825_v0, 0.0 }
 0x26e   : > { %v685_v55 = vpop.permute.xlu1 %684  ;;  %v681_v57 = vpop.permute.xlu0 %680 }
 0x26f   : > { %v858_v60 = vsub.f32 %v2786_v20, %v685_v55  ;;  %v857_v6 = vsub.f32 %v2792_v34, %v681_v57 }
 0x270   : > { %1158 = vperm.xlu0 %2232, %v920_v53   ;;  %1059 = vperm.xlu1 %2231, %v887_v51  }
 0x271   : > { %v922_v1 = vmax.f32 %v858_v60, 0.0  ;;  %v921_v13 = vmax.f32 %v857_v6, 0.0 }
 0x272   : > { %v520_v61 = vpop.permute.xlu1 %519  ;;  %v516_v62 = vpop.permute.xlu0 %515 }
 0x273   : > { %v828_v2 = vsub.f32 %v2786_v20, %v520_v61  ;;  %v827_v14 = vsub.f32 %v2792_v34, %v516_v62 }
 0x274   : > { %1068 = vperm.xlu0 %2232, %v890_v59   ;;  %1149 = vperm.xlu1 %2231, %v917_v56  }
 0x275   : > { %v892_v7 = vmax.f32 %v828_v2, 0.0  ;;  %v891_v19 = vmax.f32 %v827_v14, 0.0 }
 0x276   : > { %v696_v3 = vpop.permute.xlu1 %695  ;;  %v692_v4 = vpop.permute.xlu0 %691 }
 0x277   : > { %v860_v8 = vsub.f32 %v2786_v20, %v696_v3  ;;  %v859_v21 = vsub.f32 %v2792_v34, %v692_v4 }
 0x278   : > { %1164 = vperm.xlu0 %2232, %v922_v1   ;;  %1155 = vperm.xlu1 %2231, %v919_v63  }
 0x279   : > { %v924_v15 = vmax.f32 %v860_v8, 0.0  ;;  %v923_v33 = vmax.f32 %v859_v21, 0.0 }
 0x27a   : > { %v531_v11 = vpop.permute.xlu1 %530  ;;  %v527_v12 = vpop.permute.xlu0 %526 }
 0x27b   : > { %v830_v16 = vsub.f32 %v2786_v20, %v531_v11  ;;  %v829_v35 = vsub.f32 %v2792_v34, %v527_v12 }
 0x27c   : > { %1074 = vperm.xlu0 %2232, %v892_v7   ;;  %1065 = vperm.xlu1 %2231, %v889_v5  }
 0x27d   : > { %v894_v22 = vmax.f32 %v830_v16, 0.0  ;;  %v893_v41 = vmax.f32 %v829_v35, 0.0 }
 0x27e   : > { %v707_v17 = vpop.permute.xlu1 %706  ;;  %v703_v18 = vpop.permute.xlu0 %702 }
 0x27f   : > { %v862_v23 = vsub.f32 %v2786_v20, %v707_v17  ;;  %v861_v42 = vsub.f32 %v2792_v34, %v703_v18 }
 0x280   : > { %1170 = vperm.xlu0 %2232, %v924_v15   ;;  %1161 = vperm.xlu1 %2231, %v921_v13  }
 0x281   : > { %v926_v36 = vmax.f32 %v862_v23, 0.0  ;;  %v925_v47 = vmax.f32 %v861_v42, 0.0 }
 0x282   : > { %v542_v26 = vpop.permute.xlu1 %541  ;;  %v538_v27 = vpop.permute.xlu0 %537 }
 0x283   : > { %v832_v38 = vsub.f32 %v2786_v20, %v542_v26  ;;  %v831_v48 = vsub.f32 %v2792_v34, %v538_v27 }
 0x284   : > { %1080 = vperm.xlu0 %2232, %v894_v22   ;;  %1071 = vperm.xlu1 %2231, %v891_v19  }
 0x285   : > { %v896_v43 = vmax.f32 %v832_v38, 0.0  ;;  %v895_v53 = vmax.f32 %v831_v48, 0.0 }
 0x286   : > { %v718_v39 = vpop.permute.xlu1 %717  ;;  %v714_v40 = vpop.permute.xlu0 %713 }
 0x287   : > { %v864_v44 = vsub.f32 %v2786_v20, %v718_v39  ;;  %v863_v54 = vsub.f32 %v2792_v34, %v714_v40 }
 0x288   : > { %1176 = vperm.xlu0 %2232, %v926_v36   ;;  %1167 = vperm.xlu1 %2231, %v923_v33  }
 0x289   : > { %v928_v49 = vmax.f32 %v864_v44, 0.0  ;;  %v927_v59 = vmax.f32 %v863_v54, 0.0 }
 0x28a   : > { %v553_v45 = vpop.permute.xlu1 %552  ;;  %v549_v46 = vpop.permute.xlu0 %548 }
 0x28b   : > { %v834_v50 = vsub.f32 %v2786_v20, %v553_v45  ;;  %v833_v60 = vsub.f32 %v2792_v34, %v549_v46 }
 0x28c   : > { %1086 = vperm.xlu0 %2232, %v896_v43   ;;  %1077 = vperm.xlu1 %2231, %v893_v41  }
 0x28d   : > { %v898_v55 = vmax.f32 %v834_v50, 0.0  ;;  %v897_v1 = vmax.f32 %v833_v60, 0.0 }
 0x28e   : > { %v729_v51 = vpop.permute.xlu1 %728  ;;  %v725_v52 = vpop.permute.xlu0 %724 }
 0x28f   : > { %v866_v57 = vsub.f32 %v2786_v20, %v729_v51  ;;  %v865_v2 = vsub.f32 %v2792_v34, %v725_v52 }
 0x290   : > { %1182 = vperm.xlu0 %2232, %v928_v49   ;;  %1173 = vperm.xlu1 %2231, %v925_v47  }
 0x291   : > { %v930_v61 = vmax.f32 %v866_v57, 0.0  ;;  %v929_v8 = vmax.f32 %v865_v2, 0.0 }
 0x292   : > { %v564_v56 = vpop.permute.xlu1 %563  ;;  %v560_v58 = vpop.permute.xlu0 %559 }
 0x293   : > { %v836_v62 = vsub.f32 %v2786_v20, %v564_v56  ;;  %v835_v11 = vsub.f32 %v2792_v34, %v560_v58 }
 0x294   : > { %1092 = vperm.xlu0 %2232, %v898_v55   ;;  %1083 = vperm.xlu1 %2231, %v895_v53  }
 0x295   : > { %v900_v3 = vmax.f32 %v836_v62, 0.0  ;;  %v899_v14 = vmax.f32 %v835_v11, 0.0 }
 0x296   : > { %v2822_v63 = vpop.permute.xlu1 %739  ;;  %v2824_v0 = vpop.permute.xlu0 %735 }
 0x298   : > { %1188 = vperm.xlu0 %2232, %v930_v61   ;;  %1179 = vperm.xlu1 %2231, %v927_v59  }
 0x29a   : > { %v399_v4 = vpop.permute.xlu1 %398  ;;  %v395_v5 = vpop.permute.xlu0 %394 }
 0x29b   : > { %v805_v6 = vsub.f32 %v2792_v34, %v395_v5  ;;  %v806_v15 = vsub.f32 %v2786_v20, %v399_v4 }
 0x29c   : > { %1098 = vperm.xlu0 %2232, %v900_v3   ;;  %1089 = vperm.xlu1 %2231, %v897_v1  }
 0x29d   : > { %v869_v7 = vmax.f32 %v805_v6, 0.0  ;;  %v870_v21 = vmax.f32 %v806_v15, 0.0 }
 0x29e   : > { %v406_v12 = vpop.permute.xlu1 %405  ;;  %v571_v13 = vpop.permute.xlu0 %570 }
 0x29f   : > { %v807_v22 = vsub.f32 %v2792_v34, %v406_v12  ;;  %v837_v36 = vsub.f32 %v2792_v34, %v571_v13 }
 0x2a0   : > { %1185 = vperm.xlu1 %2231, %v929_v8   ;;  %1005 = vperm.xlu0 %2232, %v869_v7  }
 0x2a1   : > { %v871_v35 = vmax.f32 %v807_v22, 0.0  ;;  %v901_v42 = vmax.f32 %v837_v36, 0.0 }
 0x2a2   : > { %v410_v16 = vpop.permute.xlu1 %409  ;;  %v582_v17 = vpop.permute.xlu0 %581 }
 0x2a3   : > { %v808_v18 = vsub.f32 %v2786_v20, %v410_v16  ;;  %v839_v43 = vsub.f32 %v2792_v34, %v582_v17 }
 0x2a4   : > { %1095 = vperm.xlu1 %2231, %v899_v14  }
 0x2a5   : > { %v872_v19 = vmax.f32 %v808_v18, 0.0  ;;  %v903_v48 = vmax.f32 %v839_v43, 0.0 }
 0x2a6   : > { %v575_v23 = vpop.permute.xlu1 %574  ;;  %v417_v26 = vpop.permute.xlu0 %416 }
 0x2a7   : > { %v838_v27 = vsub.f32 %v2786_v20, %v575_v23  ;;  %1014 = vperm.xlu0 %2232, %v872_v19   ;;  %v809_v49 = vsub.f32 %v2792_v34, %v417_v26 }
 0x2a8   : > { %1008 = vperm.xlu1 %2231, %v870_v21  }
 0x2a9   : > { %v902_v33 = vmax.f32 %v838_v27, 0.0  ;;  %v873_v54 = vmax.f32 %v809_v49, 0.0 }
 0x2aa   : > { %v586_v38 = vpop.permute.xlu1 %585  ;;  %v593_v39 = vpop.permute.xlu0 %592 }
 0x2ab   : > { %v840_v40 = vsub.f32 %v2786_v20, %v586_v38  ;;  %1104 = vperm.xlu0 %2232, %v902_v33   ;;  %v841_v55 = vsub.f32 %v2792_v34, %v593_v39 }
 0x2ac   : > { %1011 = vperm.xlu1 %2231, %v871_v35  }
 0x2ad   : > { %v904_v41 = vmax.f32 %v840_v40, 0.0  ;;  %v905_v60 = vmax.f32 %v841_v55, 0.0 }
 0x2ae   : > { %v421_v44 = vpop.permute.xlu1 %420  ;;  %v428_v45 = vpop.permute.xlu0 %427 }
 0x2af   : > { %v810_v46 = vsub.f32 %v2786_v20, %v421_v44  ;;  %1110 = vperm.xlu0 %2232, %v904_v41   ;;  %v811_v61 = vsub.f32 %v2792_v34, %v428_v45 }
 0x2b0   : > { %1101 = vperm.xlu1 %2231, %v901_v42  }
 0x2b1   : > { %v874_v47 = vmax.f32 %v810_v46, 0.0  ;;  %v875_v4 = vmax.f32 %v811_v61, 0.0  ;;  %v868_v61 = vsub.f32 %v2786_v20, %v2822_v63 }
 0x2b2   : > { %v597_v50 = vpop.permute.xlu1 %596  ;;  %v604_v51 = vpop.permute.xlu0 %603 }
 0x2b3   : > { %v842_v52 = vsub.f32 %v2786_v20, %v597_v50  ;;  %1020 = vperm.xlu0 %2232, %v874_v47   ;;  %v843_v5 = vsub.f32 %v2792_v34, %v604_v51 }
 0x2b4   : > { %1107 = vperm.xlu1 %2231, %v903_v48  }
 0x2b5   : > { %v906_v53 = vmax.f32 %v842_v52, 0.0  ;;  %v907_v12 = vmax.f32 %v843_v5, 0.0 }
 0x2b6   : > { %v432_v57 = vpop.permute.xlu1 %431  ;;  %v439_v56 = vpop.permute.xlu0 %438 }
 0x2b7   : > { %v812_v58 = vsub.f32 %v2786_v20, %v432_v57  ;;  %1116 = vperm.xlu0 %2232, %v906_v53   ;;  %v813_v13 = vsub.f32 %v2792_v34, %v439_v56 }
 0x2b8   : > { %1017 = vperm.xlu1 %2231, %v873_v54  }
 0x2b9   : > { %v876_v59 = vmax.f32 %v812_v58, 0.0  ;;  %v877_v18 = vmax.f32 %v813_v13, 0.0  ;;  %v2873_v13 = vand.u32 127, %v389_v30 }
 0x2ba   : > { %v608_v62 = vpop.permute.xlu1 %607  ;;  %v615_v1 = vpop.permute.xlu0 %614 }
 0x2bb   : > { %v844_v2 = vsub.f32 %v2786_v20, %v608_v62  ;;  %1026 = vperm.xlu0 %2232, %v876_v59   ;;  %v845_v19 = vsub.f32 %v2792_v34, %v615_v1  ;;  %vm938_vm12 = vcmp.eq.s32.totalorder %v2685_v31, %v2873_v13 }
 0x2bc   : > { %1113 = vperm.xlu1 %2231, %v905_v60  }
 0x2bd   : > { %v908_v3 = vmax.f32 %v844_v2, 0.0  ;;  %v909_v27 = vmax.f32 %v845_v19, 0.0 }
 0x2be   : > { %v443_v6 = vpop.permute.xlu1 %442  ;;  %v450_v7 = vpop.permute.xlu0 %449 }
 0x2bf   : > { %v814_v8 = vsub.f32 %v2786_v20, %v443_v6  ;;  %1122 = vperm.xlu0 %2232, %v908_v3   ;;  %v815_v33 = vsub.f32 %v2792_v34, %v450_v7  ;;  %v932_v3 = vmax.f32 %v868_v61, 0.0 }
 0x2c0   : > { %1023 = vperm.xlu1 %2231, %v875_v4   ;;  %v867_v4 = vsub.f32 %v2792_v34, %v2824_v0  ;;  %v1200_v0 = vadd.s32 4294967288, %v2873_v13 }
 0x2c1   : > { %v878_v11 = vmax.f32 %v814_v8, 0.0  ;;  %v879_v39 = vmax.f32 %v815_v33, 0.0 }
 0x2c2   : > { %v619_v14 = vpop.permute.xlu1 %618  ;;  %v626_v16 = vpop.permute.xlu0 %625  ;;  %v931_v7 = vmax.f32 %v867_v4, 0.0 }
 0x2c3   : > { %v846_v15 = vsub.f32 %v2786_v20, %v619_v14  ;;  %1032 = vperm.xlu0 %2232, %v878_v11   ;;  %v847_v40 = vsub.f32 %v2792_v34, %v626_v16 }
 0x2c4   : > { %1119 = vperm.xlu1 %2231, %v907_v12  }
 0x2c5   : > { %v910_v17 = vmax.f32 %v846_v15, 0.0  ;;  %v911_v45 = vmax.f32 %v847_v40, 0.0 }
 0x2c6   : > { %v454_v21 = vpop.permute.xlu1 %453  ;;  %v461_v26 = vpop.permute.xlu0 %460 }
 0x2c7   : > { %v816_v22 = vsub.f32 %v2786_v20, %v454_v21  ;;  %1128 = vperm.xlu0 %2232, %v910_v17   ;;  %v817_v46 = vsub.f32 %v2792_v34, %v461_v26  ;;  %v2880_v17 = vsub.s32 %v2873_v13, %v2685_v31 }
 0x2c8   : > { %1029 = vperm.xlu1 %2231, %v877_v18   ;;  %v2883_v18 = vsub.s32 %v1200_v0, %v2685_v31 }
 0x2c9   : > { %v880_v23 = vmax.f32 %v816_v22, 0.0  ;;  %v881_v51 = vmax.f32 %v817_v46, 0.0 }
 0x2ca   : > { %v630_v35 = vpop.permute.xlu1 %629  ;;  %v637_v42 = vpop.permute.xlu0 %636 }
 0x2cb   : > { %v848_v36 = vsub.f32 %v2786_v20, %v630_v35  ;;  %1038 = vperm.xlu0 %2232, %v880_v23   ;;  %v849_v52 = vsub.f32 %v2792_v34, %v637_v42 }
 0x2cc   : > { %1125 = vperm.xlu1 %2231, %v909_v27  }
 0x2cd   : > { %v912_v38 = vmax.f32 %v848_v36, 0.0  ;;  %v913_v57 = vmax.f32 %v849_v52, 0.0 }
 0x2ce   : > { %v465_v41 = vpop.permute.xlu1 %464  ;;  %v472_v49 = vpop.permute.xlu0 %471 }
 0x2cf   : > { %v818_v43 = vsub.f32 %v2786_v20, %v465_v41  ;;  %1134 = vperm.xlu0 %2232, %v912_v38   ;;  %v819_v56 = vsub.f32 %v2792_v34, %v472_v49 }
 0x2d0   : > { %1035 = vperm.xlu1 %2231, %v879_v39  }
 0x2d1   : > { %v882_v44 = vmax.f32 %v818_v43, 0.0  ;;  %v883_v1 = vmax.f32 %v819_v56, 0.0 }
 0x2d2   : > { %v641_v47 = vpop.permute.xlu1 %640  ;;  %v648_v59 = vpop.permute.xlu0 %647 }
 0x2d3   : > { %v850_v48 = vsub.f32 %v2786_v20, %v641_v47  ;;  %1044 = vperm.xlu0 %2232, %v882_v44   ;;  %v851_v2 = vsub.f32 %v2792_v34, %v648_v59 }
 0x2d4   : > { %1131 = vperm.xlu1 %2231, %v911_v45  }
 0x2d5   : > { %v914_v50 = vmax.f32 %v850_v48, 0.0  ;;  %v915_v5 = vmax.f32 %v851_v2, 0.0 }
 0x2d6   : > { %v476_v53 = vpop.permute.xlu1 %475 }
 0x2d7   : > { %v820_v54 = vsub.f32 %v2786_v20, %v476_v53  ;;  %1140 = vperm.xlu0 %2232, %v914_v50  }
 0x2d8   : > { %1041 = vperm.xlu1 %2231, %v881_v51  }
 0x2d9   : > { %v884_v55 = vmax.f32 %v820_v54, 0.0 }
 0x2da   : > { %v652_v58 = vpop.permute.xlu1 %651 }
 0x2db   : > { %v852_v60 = vsub.f32 %v2786_v20, %v652_v58  ;;  %1050 = vperm.xlu0 %2232, %v884_v55  }
 0x2dc   : > { %1137 = vperm.xlu1 %2231, %v913_v57  }
 0x2dd   : > { %v916_v62 = vmax.f32 %v852_v60, 0.0 }
 0x2df   : > { %1146 = vperm.xlu0 %2232, %v916_v62  }
 0x2e0   : > { %1047 = vperm.xlu1 %2231, %v883_v1  }
 0x2e3   : > { %1194 = vperm.xlu0 %2232, %v932_v3   ;;  %v2864_v6 = vpop.permute.xlu0 %1056 }
 0x2e4   : > { %1143 = vperm.xlu1 %2231, %v915_v5  }
 0x2e7   : > { %v2866_v8 = vpop.permute.xlu0 %1062 }
 0x2e8   : > { %1191 = vperm.xlu1 %2231, %v931_v7  }
 0x2eb   : > { %v2868_v20 = vpop.permute.xlu1 %1053  ;;  %v1153_v63 = vpop.permute.xlu0 %1152 }
 0x2ec   : > { %v1421_v26 = vrot.slane %v1153_v63, %v2883_v18  ;;  %v1273_v5 = vrot.slane %v2868_v20, %v2880_v17 }
 0x2ef   : > { %v2870_v11 = vpop.permute.xlu1 %1059  ;;  %v1159_v12 = vpop.permute.xlu0 %1158 }
 0x2f0   : > { %v1430_v30 = vrot.slane %v1159_v12, %v2883_v18  ;;  %v1282_v3 = vrot.slane %v2870_v11, %v2880_v17  ;;  %v1277_v11 = vrot.slane %v2864_v6, %v2883_v18 }
 0x2f3   : > { %v1150_v14 = vpop.permute.xlu1 %1149  ;;  %v2875_v34 = vpop.permute.xlu0 %1068 }
 0x2f4   : > { %v1417_v23 = vrot.slane %v1150_v14, %v2880_v17  ;;  %v1286_v14 = vrot.slane %v2866_v8, %v2883_v18  ;;  %v1278_v8 = vsel %vm1205_vm2, %v1277_v11, %v1273_v5 }
 0x2f6   : > { %v1422_v39 = vsel %vm1205_vm2, %v1421_v26, %v1417_v23  ;;  %v1287_v20 = vsel %vm1205_vm2, %v1286_v14, %v1282_v3 }
 0x2f7   : > { %v1156_v15 = vpop.permute.xlu1 %1155  ;;  %v1165_v16 = vpop.permute.xlu0 %1164 }
 0x2f8   : > { %v1426_v19 = vrot.slane %v1156_v15, %v2880_v17  ;;  %v1439_v36 = vrot.slane %v1165_v16, %v2883_v18  ;;  %v1295_v16 = vrot.slane %v2875_v34, %v2883_v18 }
 0x2fa   : > { %v1431_v27 = vsel %vm1205_vm2, %v1430_v30, %v1426_v19 }
 0x2fb   : > { %v1066_v21 = vpop.permute.xlu1 %1065  ;;  %v2886_v22 = vpop.permute.xlu0 %1074  ;;  %v1514_v40 = vsel %vm1486_vm3, %v1431_v27, %v1422_v39 }
 0x2fc   : > { %v1291_v7 = vrot.slane %v1066_v21, %v2880_v17  ;;  %v1304_v21 = vrot.slane %v2886_v22, %v2883_v18  ;;  %v1500_v22 = vsel %vm1486_vm3, %v1287_v20, %v1278_v8 }
 0x2fe   : > { %v1296_v23 = vsel %vm1205_vm2, %v1295_v16, %v1291_v7 }
 0x2ff   : > { %v1162_v33 = vpop.permute.xlu1 %1161  ;;  %v1171_v35 = vpop.permute.xlu0 %1170 }
 0x300   : > { %v1435_v38 = vrot.slane %v1162_v33, %v2880_v17  ;;  %v1448_v47 = vrot.slane %v1171_v35, %v2883_v18 }
 0x302   : > { %v1440_v41 = vsel %vm1205_vm2, %v1439_v36, %v1435_v38 }
 0x303   : > { %v1515_v42 = vsel %vm1488_vm4, %v1440_v41, %v1514_v40  ;;  %v1072_v43 = vpop.permute.xlu1 %1071  ;;  %v1081_v44 = vpop.permute.xlu0 %1080  ;;  %v2939_v40 = vadd.s32 8, %v2685_v31  ;;  %v1501_v41 = vsel %vm1488_vm4, %v1296_v23, %v1500_v22 }
 0x304   : > { %v1300_v0 = vrot.slane %v1072_v43, %v2880_v17  ;;  %v1313_v26 = vrot.slane %v1081_v44, %v2883_v18 }
 0x305   : > { %vm939_vm10 = vcmp.eq.s32.totalorder %v2939_v40, %v2873_v13 }
 0x306   : > { %v1305_v34 = vsel %vm1205_vm2, %v1304_v21, %v1300_v0 }
 0x307   : > { %v1168_v45 = vpop.permute.xlu1 %1167  ;;  %v1177_v46 = vpop.permute.xlu0 %1176 }
 0x308   : > { %v1444_v48 = vrot.slane %v1168_v45, %v2880_v17  ;;  %v1457_v55 = vrot.slane %v1177_v46, %v2883_v18  ;;  %v1502_v45 = vsel %vm1490_vm5, %v1305_v34, %v1501_v41 }
 0x30a   : > { %v1449_v49 = vsel %vm1205_vm2, %v1448_v47, %v1444_v48 }
 0x30b   : > { %v1516_v50 = vsel %vm1490_vm5, %v1449_v49, %v1515_v42  ;;  %v1078_v51 = vpop.permute.xlu1 %1077  ;;  %v1087_v52 = vpop.permute.xlu0 %1086 }
 0x30c   : > { %v1309_v19 = vrot.slane %v1078_v51, %v2880_v17  ;;  %v1322_v33 = vrot.slane %v1087_v52, %v2883_v18 }
 0x30e   : > { %v1314_v38 = vsel %vm1205_vm2, %v1313_v26, %v1309_v19 }
 0x30f   : > { %v1174_v53 = vpop.permute.xlu1 %1173  ;;  %v1183_v54 = vpop.permute.xlu0 %1182  ;;  %v1503_v49 = vsel %vm1492_vm6, %v1314_v38, %v1502_v45 }
 0x310   : > { %v1453_v57 = vrot.slane %v1174_v53, %v2880_v17  ;;  %v1466_v1 = vrot.slane %v1183_v54, %v2883_v18 }
 0x312   : > { %v1458_v56 = vsel %vm1205_vm2, %v1457_v55, %v1453_v57 }
 0x313   : > { %v1517_v58 = vsel %vm1492_vm6, %v1458_v56, %v1516_v50  ;;  %v1084_v59 = vpop.permute.xlu1 %1083  ;;  %v1093_v60 = vpop.permute.xlu0 %1092 }
 0x314   : > { %v1318_v30 = vrot.slane %v1084_v59, %v2880_v17  ;;  %v1331_v39 = vrot.slane %v1093_v60, %v2883_v18 }
 0x316   : > { %v1323_v42 = vsel %vm1205_vm2, %v1322_v33, %v1318_v30 }
 0x317   : > { %v1180_v61 = vpop.permute.xlu1 %1179  ;;  %v1189_v62 = vpop.permute.xlu0 %1188  ;;  %v1504_v52 = vsel %vm1494_vm7, %v1323_v42, %v1503_v49 }
 0x318   : > { %v1462_v2 = vrot.slane %v1180_v61, %v2880_v17  ;;  %v1475_v35 = vrot.slane %v1189_v62, %v2883_v18 }
 0x31a   : > { %v1467_v4 = vsel %vm1205_vm2, %v1466_v1, %v1462_v2 }
 0x31b   : > { %v1518_v63 = vsel %vm1494_vm7, %v1467_v4, %v1517_v58  ;;  %v1090_v12 = vpop.permute.xlu1 %1089  ;;  %v1099_v15 = vpop.permute.xlu0 %1098 }
 0x31c   : > { %v1327_v6 = vrot.slane %v1090_v12, %v2880_v17  ;;  %v1340_v50 = vrot.slane %v1099_v15, %v2883_v18 }
 0x31e   : > { %v1332_v46 = vsel %vm1205_vm2, %v1331_v39, %v1327_v6 }
 0x31f   : > { %v1186_v27 = vpop.permute.xlu1 %1185  ;;  %v2944_v44 = vpop.permute.xlu0 %1005  ;;  %v1505_v55 = vsel %vm1496_vm8, %v1332_v46, %v1504_v52 }
 0x320   : > { %v1471_v36 = vrot.slane %v1186_v27, %v2880_v17 }
 0x322   : > { %v1476_v43 = vsel %vm1205_vm2, %v1475_v35, %v1471_v36 }
 0x323   : > { %v1096_v47 = vpop.permute.xlu1 %1095  ;;  %v2949_v48 = vsel %vm1496_vm8, %v1476_v43, %v1518_v63 }
 0x324   : > { %v1336_v51 = vrot.slane %v1096_v47, %v2880_v17 }
 0x326   : > { %v1341_v53 = vsel %vm1205_vm2, %v1340_v50, %v1336_v51  ;;  %v2958_v54 = vpop.permute.xlu0 %1014 }
 0x327   : > { %v2961_v57 = vpop.permute.xlu1 %1008  ;;  %v2964_v56 = vsel %vm1498_vm9, %v1341_v53, %v1505_v55 }
 0x328   : > { %v2970_v58 = vsel %vm939_vm10, inf, %v2964_v56 }
 0x329   : > { %v1533_v59 = vsel %vm1529_vm11, %v2970_v58, inf }
 0x32a   : > { %1534 = vmin.xlane.f32.xlu0 %v1533_v59  ;;  %v1105_v60 = vpop.permute.xlu0 %1104 }
 0x32b   : > { %v1012_v61 = vpop.permute.xlu1 %1011  ;;  %v1349_v20 = vrot.slane %v1105_v60, %v2883_v18 }
 0x32c   : > { %v1210_v55 = vrot.slane %v1012_v61, %v2880_v17 }
 0x32e   : > { %v1111_v62 = vpop.permute.xlu0 %1110 }
 0x32f   : > { %v1102_v1 = vpop.permute.xlu1 %1101  ;;  %v1358_v11 = vrot.slane %v1111_v62, %v2883_v18  ;;  %v1204_v62 = vrot.slane %v2961_v57, %v2883_v18 }
 0x330   : > { %v1345_v16 = vrot.slane %v1102_v1, %v2880_v17 }
 0x332   : > { %v1021_v2 = vpop.permute.xlu0 %1020  ;;  %v1350_v26 = vsel %vm1205_vm2, %v1349_v20, %v1345_v16 }
 0x333   : > { %v1108_v3 = vpop.permute.xlu1 %1107  ;;  %v1223_v61 = vrot.slane %v1021_v2, %v2883_v18 }
 0x334   : > { %v1354_v12 = vrot.slane %v1108_v3, %v2880_v17 }
 0x336   : > { %v1117_v4 = vpop.permute.xlu0 %1116  ;;  %v1359_v21 = vsel %vm1205_vm2, %v1358_v11, %v1354_v12 }
 0x337   : > { %v1018_v5 = vpop.permute.xlu1 %1017  ;;  %v1367_v19 = vrot.slane %v1117_v4, %v2883_v18  ;;  %v1507_v34 = vsel %vm1486_vm3, %v1359_v21, %v1350_v26 }
 0x338   : > { %v1219_v1 = vrot.slane %v1018_v5, %v2880_v17 }
 0x33a   : > { %v1027_v7 = vpop.permute.xlu0 %1026 }
 0x33b   : > { %v1114_v63 = vpop.permute.xlu1 %1113  ;;  %v1232_v57 = vrot.slane %v1027_v7, %v2883_v18 }
 0x33c   : > { %v1363_v0 = vrot.slane %v1114_v63, %v2880_v17  ;;  %v1214_v63 = vrot.slane %v2958_v54, %v2883_v18  ;;  %v1224_v54 = vsel %vm1205_vm2, %v1223_v61, %v1219_v1 }
 0x33e   : > { %v1123_v14 = vpop.permute.xlu0 %1122  ;;  %v1368_v8 = vsel %vm1205_vm2, %v1367_v19, %v1363_v0  ;;  %v1215_v11 = vsel %vm1205_vm2, %v1214_v63, %v1210_v55 }
 0x33f   : > { %v1024_v15 = vpop.permute.xlu1 %1023  ;;  %v1376_v6 = vrot.slane %v1123_v14, %v2883_v18  ;;  %v1508_v33 = vsel %vm1488_vm4, %v1368_v8, %v1507_v34  ;;  %v1199_v14 = vrot.slane %v2944_v44, %v2880_v17 }
 0x340   : > { %v1228_v12 = vrot.slane %v1024_v15, %v2880_v17 }
 0x341   : > { %v1206_v19 = vsel %vm1205_vm2, %v1204_v62, %v1199_v14 }
 0x342   : > { %v1033_v30 = vpop.permute.xlu0 %1032  ;;  %v1233_v2 = vsel %vm1205_vm2, %v1232_v57, %v1228_v12 }
 0x343   : > { %v1120_v23 = vpop.permute.xlu1 %1119  ;;  %v1241_v15 = vrot.slane %v1033_v30, %v2883_v18 }
 0x344   : > { %v1372_v27 = vrot.slane %v1120_v23, %v2880_v17  ;;  %v1487_v23 = vsel %vm1486_vm3, %v1215_v11, %v1206_v19 }
 0x346   : > { %v1377_v35 = vsel %vm1205_vm2, %v1376_v6, %v1372_v27  ;;  %v1129_v36 = vpop.permute.xlu0 %1128  ;;  %v1489_v27 = vsel %vm1488_vm4, %v1224_v54, %v1487_v23 }
 0x347   : > { %v1509_v22 = vsel %vm1490_vm5, %v1377_v35, %v1508_v33  ;;  %v1030_v38 = vpop.permute.xlu1 %1029  ;;  %v1385_v42 = vrot.slane %v1129_v36, %v2883_v18  ;;  %v1491_v33 = vsel %vm1490_vm5, %v1233_v2, %v1489_v27 }
 0x348   : > { %v1237_v0 = vrot.slane %v1030_v38, %v2880_v17 }
 0x34a   : > { %v1039_v39 = vpop.permute.xlu0 %1038  ;;  %v1242_v26 = vsel %vm1205_vm2, %v1241_v15, %v1237_v0 }
 0x34b   : > { %v1126_v41 = vpop.permute.xlu1 %1125  ;;  %v1250_v21 = vrot.slane %v1039_v39, %v2883_v18  ;;  %v1493_v39 = vsel %vm1492_vm6, %v1242_v26, %v1491_v33 }
 0x34c   : > { %v1381_v43 = vrot.slane %v1126_v41, %v2880_v17 }
 0x34e   : > { %v1386_v45 = vsel %vm1205_vm2, %v1385_v42, %v1381_v43  ;;  %v1135_v46 = vpop.permute.xlu0 %1134 }
 0x34f   : > { %v1510_v47 = vsel %vm1492_vm6, %v1386_v45, %v1509_v22  ;;  %v1036_v49 = vpop.permute.xlu1 %1035  ;;  %v1394_v52 = vrot.slane %v1135_v46, %v2883_v18 }
 0x350   : > { %v1246_v5 = vrot.slane %v1036_v49, %v2880_v17 }
 0x352   : > { %v1045_v50 = vpop.permute.xlu0 %1044  ;;  %v1251_v30 = vsel %vm1205_vm2, %v1250_v21, %v1246_v5 }
 0x353   : > { %v1132_v51 = vpop.permute.xlu1 %1131  ;;  %v1259_v6 = vrot.slane %v1045_v50, %v2883_v18  ;;  %v1495_v43 = vsel %vm1494_vm7, %v1251_v30, %v1493_v39 }
 0x354   : > { %v1390_v53 = vrot.slane %v1132_v51, %v2880_v17 }
 0x356   : > { %v1395_v59 = vsel %vm1205_vm2, %v1394_v52, %v1390_v53  ;;  %v1141_v60 = vpop.permute.xlu0 %1140 }
 0x357   : > { %v1511_v3 = vsel %vm1494_vm7, %v1395_v59, %v1510_v47  ;;  %v1042_v4 = vpop.permute.xlu1 %1041  ;;  %v1403_v8 = vrot.slane %v1141_v60, %v2883_v18 }
 0x358   : > { %v1255_v20 = vrot.slane %v1042_v4, %v2880_v17 }
 0x35a   : > { %v1051_v16 = vpop.permute.xlu0 %1050  ;;  %v1260_v35 = vsel %vm1205_vm2, %v1259_v6, %v1255_v20 }
 0x35b   : > { %v1138_v44 = vpop.permute.xlu1 %1137  ;;  %v1268_v41 = vrot.slane %v1051_v16, %v2883_v18  ;;  %v1497_v46 = vsel %vm1496_vm8, %v1260_v35, %v1495_v43 }
 0x35c   : > { %v1399_v7 = vrot.slane %v1138_v44, %v2880_v17 }
 0x35e   : > { %v1404_v34 = vsel %vm1205_vm2, %v1403_v8, %v1399_v7  ;;  %v1147_v36 = vpop.permute.xlu0 %1146 }
 0x35f   : > { %v1048_v22 = vpop.permute.xlu1 %1047  ;;  %v1512_v38 = vsel %vm1496_vm8, %v1404_v34, %v1511_v3  ;;  %v1412_v50 = vrot.slane %v1147_v36, %v2883_v18 }
 0x360   : > { %v1264_v42 = vrot.slane %v1048_v22, %v2880_v17 }
 0x362   : > { %v1269_v45 = vsel %vm1205_vm2, %v1268_v41, %v1264_v42  ;;  %v1195_v55 = vpop.permute.xlu0 %1194 }
 0x363   : > { %v1144_v47 = vpop.permute.xlu1 %1143  ;;  %v1499_v49 = vsel %vm1498_vm9, %v1269_v45, %v1497_v46  ;;  %v1484_v3 = vrot.slane %v1195_v55, %v2883_v18  ;;  %v2259_v55 = vld [vmem:[#allocation10] sm:$0xff] }
 0x364   : > { %v1408_v51 = vrot.slane %v1144_v47, %v2880_v17  ;;  %v1525_v52 = vsel %vm938_vm12, inf, %v1499_v49  ;;  %v3045_v53 = vsel %vm938_vm12, %v1499_v49, 0.0 }
 0x365   : > { %v1530_v59 = vsel %vm1529_vm11, %v1525_v52, inf }
 0x366   : > { %v1413_v60 = vsel %vm1205_vm2, %v1412_v50, %v1408_v51  ;;  %1531 = vmin.xlane.f32.xlu1 %v1530_v59  ;;  %v2260_v59 = vld [vmem:[#allocation10 + $0x8] sm:$0xff] }
 0x367   : > { %v1192_v62 = vpop.permute.xlu1 %1191  ;;  %v1513_v1 = vsel %vm1498_vm9, %v1413_v60, %v1512_v38  ;;  %v1652_v60 = vsel %vm1529_vm11, %v3045_v53, 0.0 }
 0x368   : > { %v1480_v4 = vrot.slane %v1192_v62, %v2880_v17  ;;  %v1527_v63 = vsel %vm938_vm12, inf, %v1513_v1  ;;  %v3058_v12 = vsel %vm938_vm12, %v1513_v1, 0.0  ;;  %v1649_v62 = vsel %vm939_vm10, %v2964_v56, 0.0 }
 0x369   : > { %v1536_v14 = vsel %vm1529_vm11, %v1527_v63, inf  ;;  %v1655_v1 = vsel %vm1529_vm11, %v1649_v62, 0.0 }
 0x36a   : > { %v1485_v61 = vsel %vm1205_vm2, %v1484_v3, %v1480_v4  ;;  %1537 = vmin.xlane.f32.xlu0 %v1536_v14 }
 0x36b   : > { %v3064_v0 = vsel %vm1498_vm9, %v1485_v61, %v2949_v48 }
 0x36c   : > { %v1528_v11 = vsel %vm939_vm10, inf, %v3064_v0 }
 0x36d   : > { %v1539_v57 = vsel %vm1529_vm11, %v1528_v11, inf }
 0x36e   : > { %1540 = vmin.xlane.f32.xlu0 %v1539_v57 }
 0x3b7   : > { %v3071_v31 = vpop.xlane.xlu0 %1534 }
 0x3b8   : > { %vm1543_vm13 = vcmp.le.f32.partialorder %v2970_v58, %v3071_v31 }
 0x3b9   : > { %v1547_v5 = vsel %vm1543_vm13, %v2873_v13, 16 }
 0x3ba   : > { %v1565_v16 = vsel %vm1529_vm11, %v1547_v5, 2147483647 }
 0x3bb   : > { %v1567_v19 = vshra.s32 %v1565_v16, 16  ;;  %v1566_v33 = vand.u32 65535, %v1565_v16 }
 0x3bd   : > { %v1569_v48 = vcvt.s32.f32 %v1567_v19  ;;  %v1568_v36 = vcvt.s32.f32 %v1566_v33 }
 0x3bf   : > { %1570 = vmin.xlane.f32.xlu0 %v1569_v48 }
 0x3f3   : > { %v3077_v54 = vpop.xlane.xlu1 %1531 }
 0x3f4   : > { %vm1542_vm14 = vcmp.le.f32.partialorder %v1525_v52, %v3077_v54 }
 0x3f5   : > { %v1546_v15 = vsel %vm1542_vm14, %v2873_v13, 16 }
 0x3f6   : > { %v1550_v20 = vsel %vm1529_vm11, %v1546_v15, 2147483647 }
 0x3f7   : > { %v3082_v44 = vpop.xlane.xlu0 %1537  ;;  %v1552_v2 = vshra.s32 %v1550_v20, 16  ;;  %v1551_v38 = vand.u32 65535, %v1550_v20 }
 0x3f8   : > { %vm1544_vm15 = vcmp.le.f32.partialorder %v1527_v63, %v3082_v44 }
 0x3f9   : > { %v1548_v58 = vsel %vm1544_vm15, %v2873_v13, 16  ;;  %v1554_v21 = vcvt.s32.f32 %v1552_v2  ;;  %v1553_v41 = vcvt.s32.f32 %v1551_v38 }
 0x3fa   : > { %v1580_v8 = vsel %vm1529_vm11, %v1548_v58, 2147483647 }
 0x3fb   : > { %1555 = vmin.xlane.f32.xlu1 %v1554_v21  ;;  %v3087_v7 = vpop.xlane.xlu0 %1540  ;;  %v1582_v23 = vshra.s32 %v1580_v8, 16  ;;  %v1581_v42 = vand.u32 65535, %v1580_v8 }
 0x3fc   : > { %vm1545_vm0 = vcmp.le.f32.partialorder %v1528_v11, %v3087_v7 }
 0x3fd   : > { %v1549_v26 = vsel %vm1545_vm0, %v2873_v13, 16  ;;  %v1584_v6 = vcvt.s32.f32 %v1582_v23  ;;  %v1583_v46 = vcvt.s32.f32 %v1581_v42 }
 0x3fe   : > { %v1595_v27 = vsel %vm1529_vm11, %v1549_v26, 2147483647 }
 0x3ff   : > { %1585 = vmin.xlane.f32.xlu1 %v1584_v6  ;;  %v1597_v30 = vshra.s32 %v1595_v27, 16  ;;  %v1596_v47 = vand.u32 65535, %v1595_v27 }
 0x401   : > { %v1599_v34 = vcvt.s32.f32 %v1597_v30  ;;  %v1598_v51 = vcvt.s32.f32 %v1596_v47  ;;  %v3128_v47 = vld [vmem:[%s248_s26] sm:$0x3] }
 0x403   : > { %1600 = vmin.xlane.f32.xlu0 %v1599_v34 }
 0x44c   : > { %v1571_v35 = vpop.xlane.xlu0 %1570 }
 0x44d   : > { %vm1572_vm1 = vcmp.eq.f32.partialorder %v1569_v48, %v1571_v35  ;;  %v1577_v14 = vcvt.f32.s32 %v1571_v35 }
 0x44e   : > { %v1573_v22 = vsel %vm1572_vm1, %v1568_v36, inf }
 0x44f   : > { %1574 = vmin.xlane.f32.xlu0 %v1573_v22  ;;  %v1578_v19 = vshll.u32 %v1577_v14, 16 }
 0x488   : > { %v1556_v39 = vpop.xlane.xlu1 %1555 }
 0x489   : > { %vm1557_vm4 = vcmp.eq.f32.partialorder %v1554_v21, %v1556_v39  ;;  %v1562_v61 = vcvt.f32.s32 %v1556_v39 }
 0x48a   : > { %v1558_v43 = vsel %vm1557_vm4, %v1553_v41, inf }
 0x48b   : > { %1559 = vmin.xlane.f32.xlu1 %v1558_v43  ;;  %v1563_v48 = vshll.u32 %v1562_v61, 16  ;;  %v1651_v43 = vsel %vm939_vm10, %v3064_v0, 0.0 }
 0x48c   : > { %v1586_v45 = vpop.xlane.xlu1 %1585 }
 0x48d   : > { %vm1587_vm5 = vcmp.eq.f32.partialorder %v1584_v6, %v1586_v45  ;;  %v1592_v11 = vcvt.f32.s32 %v1586_v45  ;;  %v1661_v45 = vsel %vm1529_vm11, %v1651_v43, 0.0 }
 0x48e   : > { %v1588_v49 = vsel %vm1587_vm5, %v1583_v46, inf  ;;  %v1658_v46 = vsel %vm1529_vm11, %v3058_v12, 0.0 }
 0x48f   : > { %1589 = vmin.xlane.f32.xlu1 %v1588_v49  ;;  %v1593_v2 = vshll.u32 %v1592_v11, 16  ;;  %v3132_v49 = vrot.slane %v3128_v47, %v2688_v32 }
 0x490   : > { %v1601_v50 = vpop.xlane.xlu0 %1600 }
 0x491   : > { %vm1602_vm6 = vcmp.eq.f32.partialorder %v1599_v34, %v1601_v50  ;;  %v1607_v57 = vcvt.f32.s32 %v1601_v50 }
 0x492   : > { %v1603_v52 = vsel %vm1602_vm6, %v1598_v51, inf }
 0x493   : > { %284 = vadd.xlane.f32.xlu1 %v2259_v55  ;;  %1604 = vmin.xlane.f32.xlu0 %v1603_v52  ;;  %v1608_v56 = vshll.u32 %v1607_v57, 16 }
 0x497   : > { %276 = vadd.xlane.f32.xlu1 %v2672_v24  ;;  %286 = vadd.xlane.f32.xlu0 %v2260_v59 }
 0x49b   : > { %280 = vadd.xlane.f32.xlu1 %v2678_v28  ;;  %278 = vadd.xlane.f32.xlu0 %v2674_v25 }
 0x49f   : > { %1653 = vadd.xlane.f32.xlu1 %v1652_v60  ;;  %282 = vadd.xlane.f32.xlu0 %v2680_v29 }
 0x4a3   : > { %1656 = vadd.xlane.f32.xlu0 %v1655_v1 }
 0x4dc   : > { %v1575_v4 = vpop.xlane.xlu0 %1574 }
 0x4dd   : > { %v1576_v5 = vcvt.f32.s32 %v1575_v4 }
 0x4df   : > { %v1579_v21 = vadd.s32 %v1578_v19, %v1576_v5 }
 0x4e1   : > { %vm1611_vm7 = vcmp.eq.s32.totalorder %v2873_v13, %v1579_v21 }
 0x518   : > { %v1560_v3 = vpop.xlane.xlu1 %1559 }
 0x519   : > { %v1561_v53 = vcvt.f32.s32 %v1560_v3 }
 0x51b   : > { %v1564_v8 = vadd.s32 %v1563_v48, %v1561_v53 }
 0x51c   : > { %v1590_v63 = vpop.xlane.xlu1 %1589 }
 0x51d   : > { %v1591_v15 = vcvt.f32.s32 %v1590_v63  ;;  %vm1610_vm8 = vcmp.eq.s32.totalorder %v2873_v13, %v1564_v8 }
 0x51f   : > { %v1594_v6 = vadd.s32 %v1593_v2, %v1591_v15 }
 0x520   : > { %v1605_v16 = vpop.xlane.xlu0 %1604  ;;  %v3103_v58 = vpop.xlane.xlu1 %284 }
 0x521   : > { %v1606_v20 = vcvt.f32.s32 %v1605_v16  ;;  %v1619_v23 = vrot.slane %v3103_v58, %v2880_v17  ;;  %vm1612_vm12 = vcmp.eq.s32.totalorder %v2873_v13, %v1594_v6 }
 0x523   : > { %v1609_v27 = vadd.s32 %v1608_v56, %v1606_v20 }
 0x524   : > { %v3107_v26 = vpop.xlane.xlu0 %286  ;;  %v277_v40 = vpop.xlane.xlu1 %276 }
 0x525   : > { %v1623_v30 = vrot.slane %v3107_v26, %v2883_v18  ;;  %vm1613_vm9 = vcmp.eq.s32.totalorder %v2873_v13, %v1609_v27  ;;  %v3137_v13 = vrot.slane %v3128_v47, %v2697_v37  ;;  %v1664_v51 = vsub.f32 %v277_v40, %v3103_v58 }
 0x527   : > { %v1624_v34 = vsel %vm1205_vm2, %v1623_v30, %v1619_v23  ;;  %v1668_v55 = vmul.f32 2e-06, %v1664_v51 }
 0x528   : > { %v1633_v33 = vsel %vm1611_vm7, %v1624_v34, 0.0  ;;  %v1632_v35 = vsel %vm1610_vm8, %v1624_v34, 0.0  ;;  %v1635_v38 = vsel %vm1613_vm9, %v1624_v34, 0.0  ;;  %v1634_v39 = vsel %vm1612_vm12, %v1624_v34, 0.0  ;;  %v279_v12 = vpop.xlane.xlu0 %278  ;;  %v281_v0 = vpop.xlane.xlu1 %280 }
 0x529   : > { %v1639_v36 = vsel %vm1529_vm11, %v1633_v33, 0.0  ;;  %v1636_v22 = vsel %vm1529_vm11, %v1632_v35, 0.0  ;;  %v1645_v41 = vsel %vm1529_vm11, %v1635_v38, 0.0  ;;  %v1642_v42 = vsel %vm1529_vm11, %v1634_v39, 0.0 }
 0x52a   : > { %1640 = vadd.xlane.f32.xlu0 %v1639_v36  ;;  %1637 = vadd.xlane.f32.xlu1 %v1636_v22  ;;  %v1665_v32 = vsub.f32 %v279_v12, %v3107_v26  ;;  %v1666_v5 = vsub.f32 %v281_v0, %v3103_v58 }
 0x52c   : > { %v283_v50 = vpop.xlane.xlu0 %282  ;;  %v1654_v52 = vpop.xlane.xlu1 %1653  ;;  %v1669_v60 = vmul.f32 2e-06, %v1665_v32  ;;  %v1670_v8 = vmul.f32 2e-06, %v1666_v5 }
 0x52d   : > { %v1672_v37 = vadd.f32 %v1668_v55, %v1654_v52  ;;  %v1667_v19 = vsub.f32 %v283_v50, %v3107_v26 }
 0x52e   : > { %1646 = vadd.xlane.f32.xlu0 %v1645_v41  ;;  %1643 = vadd.xlane.f32.xlu1 %v1642_v42 }
 0x52f   : > { %v1676_v1 = vadd.f32 1.28e-10, %v1672_v37  ;;  %v1671_v30 = vmul.f32 2e-06, %v1667_v19 }
 0x530   : > { %v1657_v59 = vpop.xlane.xlu0 %1656 }
 0x531   : > { %v1673_v62 = vadd.f32 %v1669_v60, %v1657_v59  ;;  %v1680_v4 = vmax.f32 %v1676_v1, 0.0 }
 0x532   : > { %1662 = vadd.xlane.f32.xlu0 %v1661_v45  ;;  %1659 = vadd.xlane.f32.xlu1 %v1658_v46 }
 0x533   : > { %v1677_v3 = vadd.f32 1.28e-10, %v1673_v62  ;;  %2241 = vrsqrt.f32 %v1680_v4  ;;  %vm1686_vm10 = vcmp.eq.f32.partialorder %v1680_v4, inf  ;;  %v1689_v32 = vand.u32 2147483648, %v1680_v4 }
 0x534   : > { %vm1688_vm13 = vcmp.eq.f32.partialorder %v1680_v4, 0.0 }
 0x535   : > { %v1681_v63 = vmax.f32 %v1677_v3, 0.0 }
 0x537   : > { %2243 = vrsqrt.f32 %v1681_v63  ;;  %vm1693_vm11 = vcmp.eq.f32.partialorder %v1681_v63, inf  ;;  %v1696_v52 = vand.u32 2147483648, %v1681_v63  ;;  %vm1695_vm14 = vcmp.eq.f32.partialorder %v1681_v63, 0.0 }
 0x53d   : > { %v2242_v38 = vpop.eup %2241 }
 0x543   : > { %1782 = vbcast.lane.b32.xlu1 %v3132_v49, 256 }
 0x547   : > { %1793 = vbcast.lane.b32.xlu1 %v3137_v13, 256 }
 0x548   : > { %1786 = vbcast.lane.b32.xlu0 %v3132_v49, 264 }
 0x54b   : > { %1797 = vbcast.lane.b32.xlu1 %v3137_v13, 264 }
 0x5b7   : > { %v1638_v14 = vpop.xlane.xlu1 %1637  ;;  %v1641_v61 = vpop.xlane.xlu0 %1640 }
 0x5b8   : > { %v1712_v11 = vsub.f32 %v277_v40, %v1638_v14  ;;  %v1713_v57 = vsub.f32 %v279_v12, %v1641_v61 }
 0x5ba   : > { %v1716_v53 = vmul.f32 2e-06, %v1712_v11  ;;  %v1717_v16 = vmul.f32 2e-06, %v1713_v57 }
 0x5bb   : > { %v1644_v48 = vpop.xlane.xlu1 %1643  ;;  %v1647_v15 = vpop.xlane.xlu0 %1646 }
 0x5bc   : > { %v1720_v20 = vadd.f32 %v1716_v53, %v3077_v54  ;;  %v1721_v2 = vadd.f32 %v1717_v16, %v3071_v31  ;;  %v1714_v56 = vsub.f32 %v281_v0, %v1644_v48  ;;  %v1715_v21 = vsub.f32 %v283_v50, %v1647_v15  ;;  %v2244_v31 = vpop.eup %2243 }
 0x5bd   : > { %v1692_v50 = vmul.f32 %v2244_v31, %v1681_v63 }
 0x5be   : > { %v1724_v23 = vadd.f32 1.28e-10, %v1720_v20  ;;  %v1725_v6 = vadd.f32 1.28e-10, %v1721_v2  ;;  %v1718_v27 = vmul.f32 2e-06, %v1714_v56 }
 0x5bf   : > { %v1719_v34 = vmul.f32 2e-06, %v1715_v21  ;;  %v1660_v33 = vpop.xlane.xlu1 %1659  ;;  %v1663_v58 = vpop.xlane.xlu0 %1662  ;;  %v1694_v51 = vsel %vm1693_vm11, %v1681_v63, %v1692_v50 }
 0x5c0   : > { %v1728_v35 = vmax.f32 %v1724_v23, 0.0  ;;  %v1729_v36 = vmax.f32 %v1725_v6, 0.0  ;;  %v1722_v26 = vadd.f32 %v1718_v27, %v3082_v44  ;;  %v1674_v22 = vadd.f32 %v1670_v8, %v1660_v33 }
 0x5c1   : > { %v1723_v54 = vadd.f32 %v1719_v34, %v3087_v7  ;;  %v1675_v39 = vadd.f32 %v1671_v30, %v1663_v58  ;;  %v1685_v44 = vmul.f32 %v2242_v38, %v1680_v4  ;;  %v1697_v60 = vsel %vm1695_vm14, %v1696_v52, %v1694_v51 }
 0x5c2   : > { %2245 = vrsqrt.f32 %v1728_v35  ;;  %v1726_v41 = vadd.f32 1.28e-10, %v1722_v26  ;;  %v1678_v42 = vadd.f32 1.28e-10, %v1674_v22  ;;  %vm1734_vm15 = vcmp.eq.f32.partialorder %v1728_v35, inf }
 0x5c3   : > { %2247 = vrsqrt.f32 %v1729_v36  ;;  %v1727_v43 = vadd.f32 1.28e-10, %v1723_v54  ;;  %v1679_v45 = vadd.f32 1.28e-10, %v1675_v39  ;;  %v1687_v7 = vsel %vm1686_vm10, %v1680_v4, %v1685_v44  ;;  %v1783_v11 = vpop.permute.xlu1 %1782  ;;  %v1787_v22 = vpop.permute.xlu0 %1786 }
 0x5c4   : > { %v1730_v46 = vmax.f32 %v1726_v41, 0.0  ;;  %v3150_v40 = vmax.f32 %v1678_v42, 0.0  ;;  %v1690_v59 = vsel %vm1688_vm13, %v1689_v32, %v1687_v7  ;;  %vm1736_vm0 = vcmp.eq.f32.partialorder %v1728_v35, 0.0 }
 0x5c5   : > { %v3152_v12 = vmax.f32 %v1727_v43, 0.0  ;;  %v3154_v0 = vmax.f32 %v1679_v45, 0.0  ;;  %v1737_v1 = vand.u32 2147483648, %v1728_v35  ;;  %vm1741_vm1 = vcmp.eq.f32.partialorder %v1729_v36, inf }
 0x5c6   : > { %2249 = vrsqrt.f32 %v1730_v46  ;;  %vm1700_vm4 = vcmp.eq.f32.partialorder %v3150_v40, inf  ;;  %vm1743_vm5 = vcmp.eq.f32.partialorder %v1729_v36, 0.0  ;;  %v1744_v14 = vand.u32 2147483648, %v1729_v36 }
 0x5c7   : > { %2251 = vrsqrt.f32 %v3152_v12  ;;  %vm1702_vm6 = vcmp.eq.f32.partialorder %v3150_v40, 0.0  ;;  %v1703_v4 = vand.u32 2147483648, %v3150_v40  ;;  %vm1748_vm7 = vcmp.eq.f32.partialorder %v1730_v46, inf  ;;  %v1794_v26 = vpop.permute.xlu1 %1793 }
 0x5c8   : > { %2253 = vrsqrt.f32 %v3150_v40  ;;  %vm1750_vm8 = vcmp.eq.f32.partialorder %v1730_v46, 0.0  ;;  %v1751_v5 = vand.u32 2147483648, %v1730_v46  ;;  %vm1707_vm9 = vcmp.eq.f32.partialorder %v3154_v0, inf }
 0x5c9   : > { %2255 = vrsqrt.f32 %v3154_v0  ;;  %vm1755_vm12 = vcmp.eq.f32.partialorder %v3152_v12, inf  ;;  %vm1757_vm10 = vcmp.eq.f32.partialorder %v3152_v12, 0.0  ;;  %v1758_v27 = vand.u32 2147483648, %v3152_v12 }
 0x5ca   : > { %v1710_v38 = vand.u32 2147483648, %v3154_v0  ;;  %vm1709_vm11 = vcmp.eq.f32.partialorder %v3154_v0, 0.0  ;;  %vm1772_vm13 = vcmask 123904   ;;  %vm1862_vm14 = vcmask 0  }
 0x5cb   : > { %v1798_v51 = vpop.permute.xlu1 %1797 }
 0x5cc   : > { %v2246_v55 = vpop.eup %2245 }
 0x5cd   : > { %v2248_v37 = vpop.eup %2247  ;;  %v1733_v62 = vmul.f32 %v2246_v55, %v1728_v35 }
 0x5ce   : > { %v1740_v3 = vmul.f32 %v2248_v37, %v1729_v36 }
 0x5cf   : > { %v1735_v61 = vsel %vm1734_vm15, %v1728_v35, %v1733_v62 }
 0x5d0   : > { %v2250_v63 = vpop.eup %2249  ;;  %v1738_v57 = vsel %vm1736_vm0, %v1737_v1, %v1735_v61  ;;  %v1742_v53 = vsel %vm1741_vm1, %v1729_v36, %v1740_v3 }
 0x5d1   : > { %v2252_v16 = vpop.eup %2251  ;;  %v1760_v19 = vsub.f32 %v1690_v59, %v1738_v57  ;;  %v1747_v48 = vmul.f32 %v2250_v63, %v1730_v46  ;;  %v1745_v15 = vsel %vm1743_vm5, %v1744_v14, %v1742_v53 }
 0x5d2   : > { %v2254_v20 = vpop.eup %2253  ;;  %v1761_v2 = vsub.f32 %v1697_v60, %v1745_v15  ;;  %v1754_v56 = vmul.f32 %v2252_v16, %v3152_v12 }
 0x5d3   : > { %v2256_v21 = vpop.eup %2255  ;;  %v1764_v8 = vadd.f32 0.2, %v1760_v19  ;;  %v1699_v23 = vmul.f32 %v2254_v20, %v3150_v40  ;;  %v1749_v6 = vsel %vm1748_vm7, %v1730_v46, %v1747_v48 }
 0x5d4   : > { %v1752_v30 = vsel %vm1750_vm8, %v1751_v5, %v1749_v6  ;;  %v1765_v34 = vadd.f32 0.2, %v1761_v2  ;;  %v1706_v33 = vmul.f32 %v2256_v21, %v3154_v0  ;;  %v1756_v58 = vsel %vm1755_vm12, %v3152_v12, %v1754_v56  ;;  %v1865_v2 = vld [vmem:[#allocation3 + $0x8] sm:$0xff] }
 0x5d5   : > { %v1768_v35 = vmax.f32 %v1764_v8, 0.0  ;;  %v1701_v36 = vsel %vm1700_vm4, %v3150_v40, %v1699_v23  ;;  %v1759_v54 = vsel %vm1757_vm10, %v1758_v27, %v1756_v58 }
 0x5d6   : > { %v1704_v39 = vsel %vm1702_vm6, %v1703_v4, %v1701_v36  ;;  %v1769_v31 = vmax.f32 %v1765_v34, 0.0  ;;  %v1708_v41 = vsel %vm1707_vm9, %v3154_v0, %v1706_v33  ;;  %v1773_v0 = vsel %vm1772_vm13, %v3128_v47, 0.0 }
 0x5d7   : > { %v1803_v42 = vmul.f32 %v1783_v11, %v1768_v35  ;;  %v1762_v43 = vsub.f32 %v1704_v39, %v1752_v30  ;;  %v1711_v45 = vsel %vm1709_vm11, %v1710_v38, %v1708_v41  ;;  %v1900_v4 = vrot.slane %v1773_v0, 4  ;;  %v1899_v30 = vld [vmem:[#allocation4 + $0x8] sm:$0xff]  ;;  %v1864_v38 = vld [vmem:[#allocation3] sm:$0xff] }
 0x5d8   : > { %v1804_v46 = vmul.f32 %v1787_v22, %v1769_v31  ;;  %v1763_v12 = vsub.f32 %v1711_v45, %v1759_v54  ;;  %v1898_v54 = vld [vmem:[#allocation4] sm:$0xff] }
 0x5d9   : > { %v1766_v44 = vadd.f32 0.2, %v1762_v43  ;;  %1812 = vperm.xlu1 %2231, %v1803_v42   ;;  %v1901_v63 = vadd.f32 %v1900_v4, %v1773_v0 }
 0x5da   : > { %1815 = vperm.xlu0 %2232, %v1804_v46   ;;  %v1767_v50 = vadd.f32 0.2, %v1763_v12  ;;  %v1848_v46 = vld [vmem:[#allocation2] sm:$0x1] }
 0x5db   : > { %v1770_v7 = vmax.f32 %v1766_v44, 0.0  ;;  %v1902_v57 = vrot.slane %v1901_v63, 2 }
 0x5dc   : > { %v1771_v40 = vmax.f32 %v1767_v50, 0.0  ;;  %v1955_v50 = vand.u32 (!%p2115_p6), 2147483647, %v2664_v10 }
 0x5dd   : > { %v1805_v32 = vmul.f32 %v1794_v26, %v1770_v7  ;;  %v1903_v5 = vadd.f32 %v1902_v57, %v1901_v63 }
 0x5de   : > { %v1806_v52 = vmul.f32 %v1798_v51, %v1771_v40 }
 0x5df   : > { %1818 = vperm.xlu1 %2231, %v1805_v32   ;;  %v1904_v53 = vrot.slane %v1903_v5, 1 }
 0x5e0   : > { %1821 = vperm.xlu0 %2232, %v1806_v52   ;;  %v2460_v52 = vmov (!%p2115_p6), 0  }
 0x5e1   : > { %v1905_v19 = vadd.f32 %v1904_v53, %v1903_v5 }
 0x5e3   : > { %2261 = vset.pattern.permute.xlu1 (!%p2115_p6), %v2460_v52 }
 0x5e4   : > { %2262 = vset.pattern.permute.xlu0 (!%p2115_p6), %v2460_v52 }
 0x603   : > { %1774 = vadd.xlane.f32.xlu1 %v1773_v0  ;;  %v1954_v0 = vand.u32 (!%p2115_p6), 2147483647, %v2662_v9 }
 0x614   : > { %1875 = vbcast.lane.b32.xlu1 %v3132_v49, 264 }
 0x618   : > { %1882 = vbcast.lane.b32.xlu1 %v3137_v13, 256 }
 0x61c   : > { %1886 = vbcast.lane.b32.xlu1 %v3137_v13, 264 }
 0x620   : > { %1911 = vbcast.lane.b32.xlu1 %v1905_v19, 264 }
 0x644   : > { %1958 = vmax.xlane.f32.xlu1 (!%p2115_p6), %v1955_v50 }
 0x658   : > { %v1813_v55 = vpop.permute.xlu1 %1812 }
 0x659   : > { %v1816_v59 = vpop.permute.xlu0 %1815  ;;  %v1826_v60 = vrot.slane %v1813_v55, %v2880_v17 }
 0x65a   : > { %v1830_v37 = vrot.slane %v1816_v59, %v2883_v18 }
 0x65c   : > { %v1831_v47 = vsel %vm1205_vm2, %v1830_v37, %v1826_v60 }
 0x65e   : > { %v1819_v62 = vpop.permute.xlu1 %1818 }
 0x65f   : > { %v1835_v1 = vrot.slane %v1819_v62, %v2880_v17  ;;  %v1822_v3 = vpop.permute.xlu0 %1821 }
 0x660   : > { %v1839_v14 = vrot.slane %v1822_v3, %v2883_v18 }
 0x662   : > { %v1840_v61 = vsel %vm1205_vm2, %v1839_v14, %v1835_v1  ;;  %vm1849_vm2 = vcmask 1024  }
 0x663   : > { %v1841_v11 = vsel %vm1486_vm3, %v1840_v61, %v1831_v47  ;;  %vm1915_vm3 = vcmask 7168  }
 0x664   : > { %v1843_v13 = vsel %vm1772_vm13, %v1841_v11, 0.0 }
 0x665   : > { %1844 = vadd.xlane.f32.xlu0 %v1843_v13  ;;  %v1962_v13 = vmul.f32 (!%p2115_p6), 0.9, %v2662_v9 }
 0x690   : > { %v1775_v16 = vpop.xlane.xlu1 %1774 }
 0x691   : > { %2257 = vrcp.f32 %v1775_v16 }
 0x694   : > { %v1876_v17 = vpop.permute.xlu1 %1875 }
 0x695   : > { %v1889_v15 = vmul.f32 %v1876_v17, %v2674_v25 }
 0x698   : > { %v1883_v48 = vpop.permute.xlu1 %1882 }
 0x699   : > { %v1890_v36 = vmul.f32 %v1883_v48, %v2678_v28 }
 0x69b   : > { %v2258_v8 = vpop.eup %2257 }
 0x69c   : > { %v1887_v18 = vpop.permute.xlu1 %1886 }
 0x69d   : > { %v1891_v20 = vmul.f32 %v1887_v18, %v2680_v29 }
 0x69f   : > { %v1893_v56 = vadd.f32 %v1891_v20, %v1889_v15 }
 0x6a0   : > { %v1912_v34 = vpop.permute.xlu1 %1911 }
 0x6a1   : > { %v1895_v21 = vadd.f32 %v1893_v56, %v1865_v2  ;;  %v1914_v25 = vadd.f32 %v1912_v34, %v1899_v30  ;;  %v1963_v56 = vmul.f32 (!%p2115_p6), 0.9, %v2664_v10 }
 0x6a3   : > { %1897 = vst [vmem:[#allocation3 + $0x8] sm:$0xff] %v1895_v21  ;;  %1917 = vst.msk [vmem:[#allocation4 + $0x8] sm:$0xff] %vm1915_vm3, %v1914_v25 }
 0x6aa   : > { %v1923_v44 = vld [vmem:[#allocation4 + $0x8] sm:$0xff] (!%p2115_p6)  ;;  %v1937_v18 = vld [vmem:[#allocation3 + $0x8] sm:$0xff] (!%p2115_p6) }
 0x6ab   : > { %v1925_v51 = vsel (!%p2115_p6), %vm1915_vm3, %v1923_v44, 0.0  ;;  %v1939_v55 = vadd.f32 (!%p2115_p6), 1e-05, %v1923_v44  ;;  %vm1975_vm0 = vcmp.gt.f32.partialorder (!%p2115_p6), %v1923_v44, 0.0 }
 0x6ac   : > { %v1977_v37 = vsel (!%p2115_p6), %vm1975_vm0, 1, %v2460_v52 }
 0x6d1   : > { %v1959_v1 = vpop.xlane.xlu1 (!%p2115_p6), %1958 }
 0x6d2   : > { %vm1961_vm5 = vcmp.eq.f32.partialorder (!%p2115_p6), %v1959_v1, 0.0 }
 0x6f2   : > { %v1845_v23 = vpop.xlane.xlu0 %1844 }
 0x6f3   : > { %v1847_v6 = vmul.f32 %v2258_v8, %v1845_v23 }
 0x6f5   : > { %v1850_v27 = vsel %vm1849_vm2, %v1847_v6, 0.0 }
 0x6f6   : > { %1851 = vadd.xlane.f32.xlu0 %v1850_v27 }
 0x70c   : > { %1871 = vbcast.lane.b32.xlu0 %v3132_v49, 256 }
 0x710   : > { %1907 = vbcast.lane.b32.xlu0 %v1905_v19, 256 }
 0x783   : > { %v1852_v29 = vpop.xlane.xlu0 %1851 }
 0x784   : > { %v1853_v33 = vrot.slane %v1852_v29, 4 }
 0x786   : > { %v1854_v58 = vadd.f32 %v1853_v33, %v1852_v29 }
 0x787   : > { %v1872_v35 = vpop.permute.xlu0 %1871 }
 0x788   : > { %v1855_v26 = vrot.slane %v1854_v58, 2  ;;  %v1888_v22 = vmul.f32 %v1872_v35, %v2672_v24 }
 0x78a   : > { %v1892_v39 = vadd.f32 %v1890_v36, %v1888_v22  ;;  %v1856_v49 = vadd.f32 %v1855_v26, %v1854_v58 }
 0x78b   : > { %v1908_v31 = vpop.permute.xlu0 %1907 }
 0x78c   : > { %v1894_v41 = vadd.f32 %v1892_v39, %v1864_v38  ;;  %v1857_v42 = vrot.slane %v1856_v49, 1  ;;  %v1913_v43 = vadd.f32 %v1908_v31, %v1898_v54 }
 0x78e   : > { %1896 = vst [vmem:[#allocation3] sm:$0xff] %v1894_v41  ;;  %v1858_v45 = vadd.f32 %v1857_v42, %v1856_v49  ;;  %1916 = vst.msk [vmem:[#allocation4] sm:$0xff] %vm1915_vm3, %v1913_v43 }
 0x790   : > { %2146 = vpush %v1858_v45 }
 0x795   : > { %v1922_v24 = vld [vmem:[#allocation4] sm:$0xff] (!%p2115_p6)  ;;  %v1936_v14 = vld [vmem:[#allocation3] sm:$0xff] (!%p2115_p6) }
 0x796   : > { %v1924_v7 = vsel (!%p2115_p6), %vm1915_vm3, %v1922_v24, 0.0  ;;  %v1938_v32 = vadd.f32 (!%p2115_p6), 1e-05, %v1922_v24  ;;  %vm1974_vm15 = vcmp.gt.f32.partialorder (!%p2115_p6), %v1922_v24, 0.0 }
 0x797   : > { %v1926_v40 = vadd.f32 (!%p2115_p6), %v1925_v51, %v1924_v7  ;;  %v1976_v60 = vsel (!%p2115_p6), %vm1974_vm15, 1, %v2460_v52 }
 0x798   : > { %2263 = vrcp.f32 (!%p2115_p6), %v1938_v32 }
 0x799   : > { %1927 = vadd.xlane.f32.xlu0 (!%p2115_p6), %v1926_v40  ;;  %2265 = vrcp.f32 (!%p2115_p6), %v1939_v55 }
 0x79d   : > { %1956 = vmax.xlane.f32.xlu0 (!%p2115_p6), %v1954_v0 }
 0x7a2   : > { %v2264_v59 = vpop.eup (!%p2115_p6), %2263 }
 0x7a3   : > { %1944 = vperm.xlu1 (!%p2115_p6), %2261, %v2264_v59   ;;  %v2266_v62 = vpop.eup (!%p2115_p6), %2265 }
 0x7a7   : > { %1979 = vperm.xlu1 (!%p2115_p6), %2261, %v1976_v60  }
 0x7ab   : > { %1982 = vperm.xlu1 (!%p2115_p6), %2261, %v1977_v37  }
 0x7b3   : > { %1949 = vperm.xlu0 (!%p2115_p6), %2262, %v2266_v62  }
 0x7bf   : > { %1921 = sbr.rel (%p2115_p6) target bundleno = 2157 (0x86d), region = 52 }
 0x7c1   : > { %s2147_s6 = spop %2146 }
 0x7c2   : > { %v1860_v12 = vstv %s2147_s6 }
 0x7c3   : > { %v1861_v28 = vadd.f32 %v1860_v12, %v1848_v46 }
 0x7c5   : > { %1863 = vst.msk [vmem:[#allocation2] sm:$0x1] %vm1862_vm14, %v1861_v28 }
 0x7cc   : > { %v1990_v34 = vld [vmem:[#allocation2] sm:$0x1] }
 0x822   : > { %v1945_v61 = vpop.permute.xlu1 %1944 }
 0x823   : > { %v1952_v4 = vmul.f32 %v1945_v61, %v1936_v14 }
 0x825   : > { %v1964_v5 = vmul.f32 0.1, %v1952_v4 }
 0x826   : > { %v1928_v3 = vpop.xlane.xlu0 %1927  ;;  %v1980_v53 = vpop.permute.xlu1 %1979 }
 0x827   : > { %v1929_v47 = vrot.slane %v1928_v3, 4  ;;  %v1966_v19 = vadd.f32 %v1964_v5, %v1962_v13  ;;  %vm1984_vm4 = vcmp.eq.s32.totalorder %v1980_v53, 1 }
 0x829   : > { %v1930_v11 = vadd.f32 %v1929_v47, %v1928_v3 }
 0x82a   : > { %v1957_v57 = vpop.xlane.xlu0 %1956  ;;  %v1983_v8 = vpop.permute.xlu1 %1982 }
 0x82b   : > { %v1931_v63 = vrot.slane %v1930_v11, 2  ;;  %vm1960_vm1 = vcmp.eq.f32.partialorder %v1957_v57, 0.0  ;;  %vm1985_vm6 = vcmp.eq.s32.totalorder %v1983_v8, 1 }
 0x82c   : > { %v1972_v48 = vsel %vm1960_vm1, %v1952_v4, %v1966_v19 }
 0x82d   : > { %v1932_v16 = vadd.f32 %v1931_v63, %v1930_v11  ;;  %v1986_v15 = vsel %vm1984_vm4, %v1972_v48, %v2662_v9  ;;  %v1991_v9 = vmul.f32 0.125, %v1990_v34 }
 0x82e   : > { %1988 = vst [vmem:[#allocation12] sm:$0xff] %v1986_v15 }
 0x82f   : > { %v1933_v17 = vrot.slane %v1932_v16, 1 }
 0x831   : > { %v1934_v20 = vadd.f32 %v1933_v17, %v1932_v16 }
 0x832   : > { %v1950_v2 = vpop.permute.xlu0 %1949 }
 0x833   : > { %2148 = vpush %v1934_v20  ;;  %v1953_v21 = vmul.f32 %v1950_v2, %v1937_v18 }
 0x835   : > { %v1965_v23 = vmul.f32 0.1, %v1953_v21 }
 0x837   : > { %v1967_v6 = vadd.f32 %v1965_v23, %v1963_v56 }
 0x839   : > { %v1973_v27 = vsel %vm1961_vm5, %v1953_v21, %v1967_v6 }
 0x83a   : > { %v1987_v30 = vsel %vm1985_vm6, %v1973_v27, %v2664_v10 }
 0x83b   : > { %1989 = vst [vmem:[#allocation12 + $0x8] sm:$0xff] %v1987_v30 }
 0x864   : > { %s2149_s10 = spop %2148 }
 0x865   : > { %p1992_p4 = scmp.gt.f32.partialorder %s2149_s10, 0.0 }
 0x867   : > { %s1993_s11 = scalar_select %p1992_p4, 1, 0 }
 0x869   : > { %v1994_v25 = vstv %s1993_s11 }
 0x86a   : > { %vm1995_vm7 = vcmp.eq.s32.totalorder %v1994_v25, 1 }
 0x86b   : > { %v1996_v29 = vsel %vm1995_vm7, %v1991_v9, 0.0 }
 0x86c   : > { %1997 = vst.msk [vmem:[#allocation11] sm:$0x1] %vm1862_vm14, %v1996_v29 }
 0x86d PF: > { %p2184_p7 = scmp.eq.s32.totalorder %s2509_s19, 3  ;;  %s2461_s27 = smov [#allocation11]  }
 0x86e   : > { %s2005_s30 = sshll.u32 %s2461_s27, 4  ;;  %s2462_s7 = smov [#allocation12]   ;;  %s2006_s30 = int_to_ptr.vmem [resolvable:$true] %s2005_s30 }
 0x86f   : > { %s2015_s18 = sshll.u32 %s2462_s7, 4  ;;  %s2353_s5 = scalar_lea.vmem %s2006_s30, 16  ;;  %s2016_s18 = int_to_ptr.vmem [resolvable:$true] %s2015_s18 }
 0x870   : > { %p2354_p11 = scmp.ne.s32.totalorder %s2006_s30, %s2353_s5  ;;  %s2359_s9 = scalar_lea.vmem %s2006_s30, 32 }
 0x871   : > { %p2360_p5 = scmp.lt.s32.totalorder %s2006_s30, %s2006_s30  ;;  %p2361_p9 = scmp.lt.s32.totalorder %s2359_s9, %s2353_s5 }
 0x872   : > { %p2355_p12 = pnand %p2354_p11, %p2184_p7 }
 0x873   : > { %p2362_p10 = por %p2361_p9, %p2360_p5 }
 0x874   : > { %p2356_p13 = pneg %p2355_p12 }
 0x876   : > { %p2363_p1 = pnand %p2362_p10, %p2356_p13 }
 0x878   : > { %2366 = shalt.err (!%p2363_p1)
}
 0x879   : > { %s2367_s13 = scalar_lea.hbm %s3274_s3, 16 }
 0x87a   : > { %p2368_p8 = scmp.ne.s32.totalorder %s3274_s3, %s2367_s13  ;;  %p2373_p2 = scmp.lt.u32.totalorder %s2367_s13, %s3274_s3 }
 0x87c   : > { %p2369_p0 = pnand %p2368_p8, %p2184_p7 }
 0x87e   : > { %p2370_p3 = pneg %p2369_p0 }
 0x880   : > { %p2375_p6 = pnand %p2373_p2, %p2370_p3 }
 0x882   : > { %2378 = shalt.err (!%p2375_p6)
}
 0x883   : > { %2161 = dma.vmem_to_hbm [thread:$0]  (%p2184_p7), %s2006_s30, 16, %s3274_s3, [#allocation7]  }
 0x884   : > { %s2379_s8 = scalar_lea.vmem %s2016_s18, 256  ;;  %p2386_p13 = scmp.lt.s32.totalorder %s2016_s18, %s2016_s18 }
 0x885   : > { %p2380_p4 = scmp.ne.s32.totalorder %s2016_s18, %s2379_s8  ;;  %p2387_p5 = scmp.lt.s32.totalorder %s2379_s8, %s2379_s8 }
 0x887   : > { %p2381_p11 = pnand %p2380_p4, %p2184_p7  ;;  %p2388_p9 = por %p2387_p5, %p2386_p13 }
 0x889   : > { %p2382_p12 = pneg %p2381_p11 }
 0x88b   : > { %p2389_p10 = pnand %p2388_p9, %p2382_p12 }
 0x88d   : > { %2392 = shalt.err (!%p2389_p10)
}
 0x88e   : > { %s2393_s6 = scalar_lea.hbm %s3275_s4, 256 }
 0x88f   : > { %p2394_p1 = scmp.ne.s32.totalorder %s3275_s4, %s2393_s6  ;;  %p2399_p3 = scmp.lt.u32.totalorder %s2393_s6, %s3275_s4 }
 0x891   : > { %p2395_p8 = pnand %p2394_p1, %p2184_p7 }
 0x893   : > { %p2396_p0 = pneg %p2395_p8 }
 0x895   : > { %p2401_p2 = pnand %p2399_p3, %p2396_p0 }
 0x897   : > { %2404 = shalt.err (!%p2401_p2)
}
 0x898   : > { %s2463_s7 = smov 128   ;;  %s2464_s5 = smov 8  }
 0x899   : > { %2163 = dma.vmem_to_hbm [thread:$0]  (%p2184_p7), %s2016_s18, 256, %s3275_s4, [#allocation13], %s2463_s7, %s2463_s7, %s2464_s5  }
 0x89a   : > { %2430 = dma.done.wait (%p2184_p7), [#allocation7], 16  }
 0x89b   : > { %2432 = vsyncadd (%p2184_p7), [#allocation7], 4294967280 }
 0x89c   : > { %2434 = dma.done.wait (%p2184_p7), [#allocation13], 256  }
 0x89d   : > { %2436 = vsyncadd (%p2184_p7), [#allocation13], 4294967040 }
 0x89e PF: > { %p18_p6 = scmp.ge.s32.totalorder %s2512_s20, 6   ;;  %s3291_s15 = smov %s2443_s16 }
 0x89f   : > { %s3292_s16 = smov %s2447_s17  ;;  %s3293_s17 = smov %s2522_s23 }
 0x8a0   : > { %s3294_s18 = smov %s2512_s20  ;;  %20 = sbr.rel (!%p18_p6) target bundleno = 6 (0x6), region = 94 }
 0x8a7   :  { %2035 = vsyncpa [#allocation6], 1 }
 0x8a8   :  { %2037 = vsyncpa [#allocation6 + $0x1], 1 }
 0x8a9   :  { %2038 = vsyncpa [#allocation9], 1 }
 0x8aa   :  { %2039 = vsyncpa [#allocation7], 1 }
 0x8ab   :  { %2041 = vsyncpa [#allocation7 + $0x1], 1 }
 0x8ac   :  { %2042 = vsyncpa [#allocation13], 1 }

</bundles_post_ra>
